<compile_context>
chip_gen: v7x
topology: tpu7x:2x2x1
jax: 0.10.0
libtpu: 0.0.40
codegen_flags: <defaults>
</compile_context>

<pallas_src>
import math

import jax
import jax.numpy as jnp
from jax.experimental import pallas as pl
from jax.experimental.pallas import tpu as pltpu  # noqa: F401 (used when scaling up)

# Small synthetic config (XLM-R-like but tiny).
S = 8              # sequence length
H = 32             # hidden size
NH = 4             # attention heads
HD = H // NH       # head dim
FFN = 4 * H        # feed-forward inner dim (=128, lane-dense)
QKVP = 128         # fused QKV output width: 3*H=96 zero-padded to 128 lanes
VOCAB = 100        # vocab size
LAYERS = 2         # number of encoder layers
EPS = 1e-12        # layer_norm_eps (f32-safe; min normal ~1.2e-38)
NEG_BIG = -1e30    # additive mask value for cross-head score entries

assert 3 * H <= QKVP


def _layernorm(x, gamma, beta):
    mu = jnp.mean(x, axis=-1, keepdims=True)
    var = jnp.mean((x - mu) ** 2, axis=-1, keepdims=True)
    return (x - mu) * jax.lax.rsqrt(var + EPS) * gamma + beta


# ----------------------------- Pallas kernel ------------------------------
# Packed per-layer vector slab rows ([LAYERS, 8, 128]):
#   0: bqkv (96 used)   1: b1 (128)   2: bo   3: ln1_g   4: ln1_b
#   5: b2               6: ln2_g      7: ln2_b            (rows 2..7: 32 used)

def encoder_kernel(emb_ref, embln_ref, hbias_ref,
                   wqkv_ref, wo_ref, w1_ref, w2_ref, vec_ref, o_ref):
    """Whole encoder in one invocation; weights resident, layers unrolled."""
    head_bias = hbias_ref[...]                           # [NH*S, NH*S] additive

    # Embedding layernorm (fused into the kernel).
    x = _layernorm(emb_ref[...], embln_ref[0:1, :], embln_ref[1:2, :])   # [S,H]

    for l in range(LAYERS):                              # static unroll (2)
        vecs = vec_ref[l]                                # [8, 128] packed slab
        bqkv = vecs[0:1, :]                              # [1, 128]
        b1 = vecs[1:2, :]                                # [1, FFN]
        bo = vecs[2:3, :H]
        g1 = vecs[3:4, :H]
        be1 = vecs[4:5, :H]
        b2 = vecs[5:6, :H]
        g2 = vecs[6:7, :H]
        be2 = vecs[7:8, :H]

        # Fused QKV projection: one lane-dense [S,H]x[H,128] MXU pass.
        # (1/sqrt(HD) attention scale folded into Wq and bq at pack time.)
        qkv = jnp.dot(x, wqkv_ref[l],
                      preferred_element_type=jnp.float32) + bqkv       # [S,128]

        # Stack the NH heads along sublanes -> [NH*S, HD] = [32, 8].
        def stack(base):
            return jnp.concatenate(
                [qkv[:, base + h * HD: base + (h + 1) * HD] for h in range(NH)],
                axis=0)
        qs = stack(0)
        ks = stack(H)
        vs = stack(2 * H)

        # ONE score matmul for all heads (contraction on last dims -> no k.T),
        # block-diagonal additive mask kills cross-head entries, ONE softmax,
        # ONE context matmul.
        sc = jax.lax.dot_general(qs, ks, (((1,), (1,)), ((), ())),
                                 preferred_element_type=jnp.float32)   # [32,32]
        sc = sc + head_bias
        sc = sc - jnp.max(sc, axis=-1, keepdims=True)
        p = jnp.exp(sc)
        p = p * pl.reciprocal(jnp.sum(p, axis=-1, keepdims=True), approx=True)
        ctx_s = jnp.dot(p, vs, preferred_element_type=jnp.float32)     # [32, 8]

        # Un-stack heads back onto lanes -> [S, H], one output projection.
        ctx = jnp.concatenate(
            [ctx_s[h * S:(h + 1) * S, :] for h in range(NH)], axis=1)  # [S, H]
        attn = jnp.dot(ctx, wo_ref[l],
                       preferred_element_type=jnp.float32) + bo

        x1 = _layernorm(x + attn, g1, be1)               # add & norm

        # Feed-forward (GELU), FFN = 4H = 128 lanes (lane-dense).
        hdn = jnp.dot(x1, w1_ref[l],
                      preferred_element_type=jnp.float32) + b1
        # TODO(synk): HF BERT/XLM-R uses exact erf GELU; tanh approximation is
        # used for a guaranteed Mosaic lowering (reference uses the same).
        hdn = jax.nn.gelu(hdn, approximate=True)
        ff = jnp.dot(hdn, w2_ref[l],
                     preferred_element_type=jnp.float32) + b2
        x = _layernorm(x1 + ff, g2, be2)                 # add & norm

    o_ref[...] = x                                       # single writeback


# ------------------------------ JAX wrapper --------------------------------

def encoder_forward(token_ids, kp):
    """token_ids: int32 [1, S]  ->  final-layer hidden states [1, S, H]."""
    ids = token_ids[0]                                   # [S]
    # Embedding gather + positional embeddings (plain XLA glue).
    # TODO(synk): no attention_mask is applied (batch=1, no padding here); a
    # real tokenizer's pad tokens would need a mask added to `head_bias`.
    emb = kp["word_emb"][ids] + kp["pos_emb"]            # [S, H]

    out = pl.pallas_call(
        encoder_kernel,
        out_shape=jax.ShapeDtypeStruct((S, H), jnp.float32),
        # No grid: everything (~120 KB) fits VMEM; full-array blocks by default.
    )(emb, kp["embln"], kp["head_bias"],
      kp["wqkv"], kp["wo"], kp["w1"], kp["w2"], kp["vec"])

    return out[None, :, :]                               # [1, S, H]


# ----------------------- params: init / pack / reference -------------------

def init_params(key):
    """Logical (unfused) parameters, mimicking an HF-style layout."""
    scale = 0.02
    keys = iter(jax.random.split(key, 4 + LAYERS * 16))

    def rnd(shape):
        return scale * jax.random.normal(next(keys), shape, dtype=jnp.float32)

    params = {
        "word_emb": rnd((VOCAB, H)),
        "pos_emb": rnd((S, H)),
        "emb_ln_g": 1.0 + rnd((H,)),
        "emb_ln_b": rnd((H,)),
        "layers": [],
    }
    for _ in range(LAYERS):
        params["layers"].append({
            "wq": rnd((H, H)), "bq": rnd((H,)),
            "wk": rnd((H, H)), "bk": rnd((H,)),
            "wv": rnd((H, H)), "bv": rnd((H,)),
            "wo": rnd((H, H)), "bo": rnd((H,)),
            "ln1_g": 1.0 + rnd((H,)), "ln1_b": rnd((H,)),
            "w1": rnd((H, FFN)), "b1": rnd((FFN,)),
            "w2": rnd((FFN, H)), "b2": rnd((H,)),
            "ln2_g": 1.0 + rnd((H,)), "ln2_b": rnd((H,)),
        })
    return params


def pack_params(params):
    """Kernel-side packing: fuse QKV, fold softmax scale, pack vector slab."""
    inv = 1.0 / math.sqrt(HD)
    pad_w = jnp.zeros((H, QKVP - 3 * H), jnp.float32)

    def pad128(v):
        return jnp.concatenate([v, jnp.zeros((QKVP - v.shape[0],), jnp.float32)])

    wqkv, wo, w1, w2, vec = [], [], [], [], []
    for lp in params["layers"]:
        wqkv.append(jnp.concatenate(
            [lp["wq"] * inv, lp["wk"], lp["wv"], pad_w], axis=1))       # [H,128]
        wo.append(lp["wo"])
        w1.append(lp["w1"])
        w2.append(lp["w2"])
        bqkv = jnp.concatenate([lp["bq"] * inv, lp["bk"], lp["bv"],
                                jnp.zeros((QKVP - 3 * H,), jnp.float32)])
        vec.append(jnp.stack(
            [bqkv, lp["b1"], pad128(lp["bo"]), pad128(lp["ln1_g"]),
             pad128(lp["ln1_b"]), pad128(lp["b2"]), pad128(lp["ln2_g"]),
             pad128(lp["ln2_b"])], axis=0))                             # [8,128]

    # Block-diagonal additive mask for the head-batched scores (precomputed).
    head_ids = jnp.arange(NH * S, dtype=jnp.int32) // S
    head_bias = jnp.where(head_ids[:, None] == head_ids[None, :],
                          0.0, NEG_BIG).astype(jnp.float32)             # [32,32]

    return {
        "word_emb": params["word_emb"],
        "pos_emb": params["pos_emb"],
        "embln": jnp.stack([params["emb_ln_g"], params["emb_ln_b"]], axis=0),
        "head_bias": head_bias,
        "wqkv": jnp.stack(wqkv, axis=0),   # [LAYERS, H, 128]
        "wo": jnp.stack(wo, axis=0),       # [LAYERS, H, H]
        "w1": jnp.stack(w1, axis=0),       # [LAYERS, H, FFN]
        "w2": jnp.stack(w2, axis=0),       # [LAYERS, FFN, H]
        "vec": jnp.stack(vec, axis=0),     # [LAYERS, 8, 128]
    }


def encoder_reference(token_ids, params):
    """Pure-JAX textbook (per-head, unfused) reference for tolerance checks."""
    ids = token_ids[0]
    x = params["word_emb"][ids] + params["pos_emb"]
    x = _layernorm(x, params["emb_ln_g"], params["emb_ln_b"])
    for lp in params["layers"]:
        q = x @ lp["wq"] + lp["bq"]
        k = x @ lp["wk"] + lp["bk"]
        v = x @ lp["wv"] + lp["bv"]
        heads = []
        for h in range(NH):
            qh = q[:, h * HD:(h + 1) * HD]
            kh = k[:, h * HD:(h + 1) * HD]
            vh = v[:, h * HD:(h + 1) * HD]
            p = jax.nn.softmax(qh @ kh.T / math.sqrt(HD), axis=-1)
            heads.append(p @ vh)
        attn = jnp.concatenate(heads, axis=1) @ lp["wo"] + lp["bo"]
        x1 = _layernorm(x + attn, lp["ln1_g"], lp["ln1_b"])
        hdn = jax.nn.gelu(x1 @ lp["w1"] + lp["b1"], approximate=True)
        x = _layernorm(x1 + hdn @ lp["w2"] + lp["b2"], lp["ln2_g"], lp["ln2_b"])
    return x[None, :, :]


if __name__ == "__main__":
    key = jax.random.PRNGKey(0)
    pkey, ikey = jax.random.split(key)
    params = init_params(pkey)
    kernel_inputs = pack_params(params)

    # Stand-in for tokenizer.encode(sentence)[None, :] -> [1, S] int token ids.
    token_ids = jax.random.randint(ikey, (1, S), 0, VOCAB, dtype=jnp.int32)

    fwd = jax.jit(encoder_forward)
    out = jax.block_until_ready(fwd(token_ids, kernel_inputs))
    assert out.shape == (1, S, H), out.shape
    assert bool(jnp.all(jnp.isfinite(out)))

    # Tolerance check vs. pure-JAX reference (approx reciprocal in softmax
    # denominator is the only intentional numeric difference).
    ref = encoder_reference(token_ids, params)
    max_err = float(jnp.max(jnp.abs(out - ref)))
    assert max_err < 5e-3, f"max |kernel - ref| = {max_err}"

    print("KERNEL_OK")
</pallas_src>

<mosaic_0001>
module attributes {stable_mosaic.version = 11 : i64} {
  func.func @encoder_kernel(%arg0: memref<8x32xf32, #tpu.memory_space<vmem>>, %arg1: memref<2x32xf32, #tpu.memory_space<vmem>>, %arg2: memref<32x32xf32, #tpu.memory_space<vmem>>, %arg3: memref<2x32x128xf32, #tpu.memory_space<vmem>>, %arg4: memref<2x32x32xf32, #tpu.memory_space<vmem>>, %arg5: memref<2x32x128xf32, #tpu.memory_space<vmem>>, %arg6: memref<2x128x32xf32, #tpu.memory_space<vmem>>, %arg7: memref<2x8x128xf32, #tpu.memory_space<vmem>>, %arg8: memref<8x32xf32, #tpu.memory_space<vmem>>) attributes {dimension_semantics = [], scalar_prefetch = 0 : i64, scratch_operands = 0 : i64, tpu.core_type = #tpu.core_type<tc>} {
    %c0 = arith.constant 0 : index
    %c0_0 = arith.constant 0 : index
    %0 = vector.load %arg2[%c0, %c0_0] : memref<32x32xf32, #tpu.memory_space<vmem>>, vector<32x32xf32>
    %c0_1 = arith.constant 0 : index
    %c0_2 = arith.constant 0 : index
    %1 = vector.load %arg0[%c0_1, %c0_2] : memref<8x32xf32, #tpu.memory_space<vmem>>, vector<8x32xf32>
    %c0_3 = arith.constant 0 : index
    %c0_4 = arith.constant 0 : index
    %2 = vector.load %arg1[%c0_3, %c0_4] : memref<2x32xf32, #tpu.memory_space<vmem>>, vector<1x32xf32>
    %c1 = arith.constant 1 : index
    %c0_5 = arith.constant 0 : index
    %3 = vector.load %arg1[%c1, %c0_5] : memref<2x32xf32, #tpu.memory_space<vmem>>, vector<1x32xf32>
    %cst = arith.constant dense<0.000000e+00> : vector<8xf32>
    %4 = vector.multi_reduction <add>, %1, %cst [1] : vector<8x32xf32> to vector<8xf32>
    %5 = vector.shape_cast %4 : vector<8xf32> to vector<8x1xf32>
    %cst_6 = arith.constant 3.200000e+01 : f32
    %6 = vector.broadcast %cst_6 : f32 to vector<8x1xf32>
    %7 = arith.divf %5, %6 : vector<8x1xf32>
    %8 = vector.broadcast %7 : vector<8x1xf32> to vector<8x32xf32>
    %9 = arith.subf %1, %8 : vector<8x32xf32>
    %10 = arith.mulf %9, %9 : vector<8x32xf32>
    %cst_7 = arith.constant dense<0.000000e+00> : vector<8xf32>
    %11 = vector.multi_reduction <add>, %10, %cst_7 [1] : vector<8x32xf32> to vector<8xf32>
    %12 = vector.shape_cast %11 : vector<8xf32> to vector<8x1xf32>
    %cst_8 = arith.constant 3.200000e+01 : f32
    %13 = vector.broadcast %cst_8 : f32 to vector<8x1xf32>
    %14 = arith.divf %12, %13 : vector<8x1xf32>
    %15 = vector.broadcast %7 : vector<8x1xf32> to vector<8x32xf32>
    %16 = arith.subf %1, %15 : vector<8x32xf32>
    %cst_9 = arith.constant 9.99999996E-13 : f32
    %17 = vector.broadcast %cst_9 : f32 to vector<8x1xf32>
    %18 = arith.addf %14, %17 : vector<8x1xf32>
    %19 = math.rsqrt %18 : vector<8x1xf32>
    %20 = vector.broadcast %19 : vector<8x1xf32> to vector<8x32xf32>
    %21 = arith.mulf %16, %20 : vector<8x32xf32>
    %22 = vector.broadcast %2 : vector<1x32xf32> to vector<8x32xf32>
    %23 = arith.mulf %21, %22 : vector<8x32xf32>
    %24 = vector.broadcast %3 : vector<1x32xf32> to vector<8x32xf32>
    %25 = arith.addf %23, %24 : vector<8x32xf32>
    %c0_10 = arith.constant 0 : index
    %c0_11 = arith.constant 0 : index
    %c0_12 = arith.constant 0 : index
    %26 = vector.load %arg7[%c0_10, %c0_11, %c0_12] : memref<2x8x128xf32, #tpu.memory_space<vmem>>, vector<1x8x128xf32>
    %27 = vector.shape_cast %26 : vector<1x8x128xf32> to vector<8x128xf32>
    %28 = vector.extract_strided_slice %27 {offsets = [0, 0], sizes = [1, 128], strides = [1, 1]} : vector<8x128xf32> to vector<1x128xf32>
    %29 = vector.extract_strided_slice %27 {offsets = [1, 0], sizes = [1, 128], strides = [1, 1]} : vector<8x128xf32> to vector<1x128xf32>
    %30 = vector.extract_strided_slice %27 {offsets = [2, 0], sizes = [1, 32], strides = [1, 1]} : vector<8x128xf32> to vector<1x32xf32>
    %31 = vector.extract_strided_slice %27 {offsets = [3, 0], sizes = [1, 32], strides = [1, 1]} : vector<8x128xf32> to vector<1x32xf32>
    %32 = vector.extract_strided_slice %27 {offsets = [4, 0], sizes = [1, 32], strides = [1, 1]} : vector<8x128xf32> to vector<1x32xf32>
    %33 = vector.extract_strided_slice %27 {offsets = [5, 0], sizes = [1, 32], strides = [1, 1]} : vector<8x128xf32> to vector<1x32xf32>
    %34 = vector.extract_strided_slice %27 {offsets = [6, 0], sizes = [1, 32], strides = [1, 1]} : vector<8x128xf32> to vector<1x32xf32>
    %35 = vector.extract_strided_slice %27 {offsets = [7, 0], sizes = [1, 32], strides = [1, 1]} : vector<8x128xf32> to vector<1x32xf32>
    %c0_13 = arith.constant 0 : index
    %c0_14 = arith.constant 0 : index
    %c0_15 = arith.constant 0 : index
    %36 = vector.load %arg3[%c0_13, %c0_14, %c0_15] : memref<2x32x128xf32, #tpu.memory_space<vmem>>, vector<1x32x128xf32>
    %37 = vector.shape_cast %36 : vector<1x32x128xf32> to vector<32x128xf32>
    %cst_16 = arith.constant dense<0.000000e+00> : vector<8x128xf32>
    %38 = tpu.matmul %25, %37, %cst_16 {dimension_numbers = #tpu.dot_dimension_numbers<[1], [0], [0], [1], [0, 0, 1, 1], [], []>} : vector<8x32xf32>, vector<32x128xf32>, vector<8x128xf32> -> vector<8x128xf32>
    %39 = vector.broadcast %28 : vector<1x128xf32> to vector<8x128xf32>
    %40 = arith.addf %38, %39 : vector<8x128xf32>
    %41 = vector.extract_strided_slice %40 {offsets = [0, 0], sizes = [8, 8], strides = [1, 1]} : vector<8x128xf32> to vector<8x8xf32>
    %42 = vector.extract_strided_slice %40 {offsets = [0, 8], sizes = [8, 8], strides = [1, 1]} : vector<8x128xf32> to vector<8x8xf32>
    %43 = vector.extract_strided_slice %40 {offsets = [0, 16], sizes = [8, 8], strides = [1, 1]} : vector<8x128xf32> to vector<8x8xf32>
    %44 = vector.extract_strided_slice %40 {offsets = [0, 24], sizes = [8, 8], strides = [1, 1]} : vector<8x128xf32> to vector<8x8xf32>
    %45 = tpu.concatenate %41, %42, %43, %44 in 0 : vector<8x8xf32>, vector<8x8xf32>, vector<8x8xf32>, vector<8x8xf32> -> vector<32x8xf32>
    %46 = vector.extract_strided_slice %40 {offsets = [0, 32], sizes = [8, 8], strides = [1, 1]} : vector<8x128xf32> to vector<8x8xf32>
    %47 = vector.extract_strided_slice %40 {offsets = [0, 40], sizes = [8, 8], strides = [1, 1]} : vector<8x128xf32> to vector<8x8xf32>
    %48 = vector.extract_strided_slice %40 {offsets = [0, 48], sizes = [8, 8], strides = [1, 1]} : vector<8x128xf32> to vector<8x8xf32>
    %49 = vector.extract_strided_slice %40 {offsets = [0, 56], sizes = [8, 8], strides = [1, 1]} : vector<8x128xf32> to vector<8x8xf32>
    %50 = tpu.concatenate %46, %47, %48, %49 in 0 : vector<8x8xf32>, vector<8x8xf32>, vector<8x8xf32>, vector<8x8xf32> -> vector<32x8xf32>
    %51 = vector.extract_strided_slice %40 {offsets = [0, 64], sizes = [8, 8], strides = [1, 1]} : vector<8x128xf32> to vector<8x8xf32>
    %52 = vector.extract_strided_slice %40 {offsets = [0, 72], sizes = [8, 8], strides = [1, 1]} : vector<8x128xf32> to vector<8x8xf32>
    %53 = vector.extract_strided_slice %40 {offsets = [0, 80], sizes = [8, 8], strides = [1, 1]} : vector<8x128xf32> to vector<8x8xf32>
    %54 = vector.extract_strided_slice %40 {offsets = [0, 88], sizes = [8, 8], strides = [1, 1]} : vector<8x128xf32> to vector<8x8xf32>
    %55 = tpu.concatenate %51, %52, %53, %54 in 0 : vector<8x8xf32>, vector<8x8xf32>, vector<8x8xf32>, vector<8x8xf32> -> vector<32x8xf32>
    %cst_17 = arith.constant dense<0.000000e+00> : vector<32x32xf32>
    %56 = tpu.matmul %45, %50, %cst_17 {dimension_numbers = #tpu.dot_dimension_numbers<[1], [1], [0], [0], [0, 0, 1, 0], [], []>} : vector<32x8xf32>, vector<32x8xf32>, vector<32x32xf32> -> vector<32x32xf32>
    %57 = arith.addf %56, %0 : vector<32x32xf32>
    %cst_18 = arith.constant dense<0xFF800000> : vector<32xf32>
    %58 = vector.multi_reduction <maximumf>, %57, %cst_18 [1] : vector<32x32xf32> to vector<32xf32>
    %59 = vector.shape_cast %58 : vector<32xf32> to vector<32x1xf32>
    %60 = vector.broadcast %59 : vector<32x1xf32> to vector<32x32xf32>
    %61 = arith.subf %57, %60 : vector<32x32xf32>
    %62 = math.exp %61 : vector<32x32xf32>
    %cst_19 = arith.constant dense<0.000000e+00> : vector<32xf32>
    %63 = vector.multi_reduction <add>, %62, %cst_19 [1] : vector<32x32xf32> to vector<32xf32>
    %64 = vector.shape_cast %63 : vector<32xf32> to vector<32x1xf32>
    %65 = tpu.reciprocal %64 {approx = true} : vector<32x1xf32> -> vector<32x1xf32>
    %66 = vector.broadcast %65 : vector<32x1xf32> to vector<32x32xf32>
    %67 = arith.mulf %62, %66 : vector<32x32xf32>
    %cst_20 = arith.constant dense<0.000000e+00> : vector<32x8xf32>
    %68 = tpu.matmul %67, %55, %cst_20 {dimension_numbers = #tpu.dot_dimension_numbers<[1], [0], [0], [1], [0, 0, 1, 1], [], []>} : vector<32x32xf32>, vector<32x8xf32>, vector<32x8xf32> -> vector<32x8xf32>
    %69 = vector.extract_strided_slice %68 {offsets = [0, 0], sizes = [8, 8], strides = [1, 1]} : vector<32x8xf32> to vector<8x8xf32>
    %70 = vector.extract_strided_slice %68 {offsets = [8, 0], sizes = [8, 8], strides = [1, 1]} : vector<32x8xf32> to vector<8x8xf32>
    %71 = vector.extract_strided_slice %68 {offsets = [16, 0], sizes = [8, 8], strides = [1, 1]} : vector<32x8xf32> to vector<8x8xf32>
    %72 = vector.extract_strided_slice %68 {offsets = [24, 0], sizes = [8, 8], strides = [1, 1]} : vector<32x8xf32> to vector<8x8xf32>
    %73 = tpu.concatenate %69, %70, %71, %72 in 1 : vector<8x8xf32>, vector<8x8xf32>, vector<8x8xf32>, vector<8x8xf32> -> vector<8x32xf32>
    %c0_21 = arith.constant 0 : index
    %c0_22 = arith.constant 0 : index
    %c0_23 = arith.constant 0 : index
    %74 = vector.load %arg4[%c0_21, %c0_22, %c0_23] : memref<2x32x32xf32, #tpu.memory_space<vmem>>, vector<1x32x32xf32>
    %75 = vector.shape_cast %74 : vector<1x32x32xf32> to vector<32x32xf32>
    %cst_24 = arith.constant dense<0.000000e+00> : vector<8x32xf32>
    %76 = tpu.matmul %73, %75, %cst_24 {dimension_numbers = #tpu.dot_dimension_numbers<[1], [0], [0], [1], [0, 0, 1, 1], [], []>} : vector<8x32xf32>, vector<32x32xf32>, vector<8x32xf32> -> vector<8x32xf32>
    %77 = vector.broadcast %30 : vector<1x32xf32> to vector<8x32xf32>
    %78 = arith.addf %76, %77 : vector<8x32xf32>
    %79 = arith.addf %25, %78 : vector<8x32xf32>
    %cst_25 = arith.constant dense<0.000000e+00> : vector<8xf32>
    %80 = vector.multi_reduction <add>, %79, %cst_25 [1] : vector<8x32xf32> to vector<8xf32>
    %81 = vector.shape_cast %80 : vector<8xf32> to vector<8x1xf32>
    %cst_26 = arith.constant 3.200000e+01 : f32
    %82 = vector.broadcast %cst_26 : f32 to vector<8x1xf32>
    %83 = arith.divf %81, %82 : vector<8x1xf32>
    %84 = vector.broadcast %83 : vector<8x1xf32> to vector<8x32xf32>
    %85 = arith.subf %79, %84 : vector<8x32xf32>
    %86 = arith.mulf %85, %85 : vector<8x32xf32>
    %cst_27 = arith.constant dense<0.000000e+00> : vector<8xf32>
    %87 = vector.multi_reduction <add>, %86, %cst_27 [1] : vector<8x32xf32> to vector<8xf32>
    %88 = vector.shape_cast %87 : vector<8xf32> to vector<8x1xf32>
    %cst_28 = arith.constant 3.200000e+01 : f32
    %89 = vector.broadcast %cst_28 : f32 to vector<8x1xf32>
    %90 = arith.divf %88, %89 : vector<8x1xf32>
    %91 = vector.broadcast %83 : vector<8x1xf32> to vector<8x32xf32>
    %92 = arith.subf %79, %91 : vector<8x32xf32>
    %cst_29 = arith.constant 9.99999996E-13 : f32
    %93 = vector.broadcast %cst_29 : f32 to vector<8x1xf32>
    %94 = arith.addf %90, %93 : vector<8x1xf32>
    %95 = math.rsqrt %94 : vector<8x1xf32>
    %96 = vector.broadcast %95 : vector<8x1xf32> to vector<8x32xf32>
    %97 = arith.mulf %92, %96 : vector<8x32xf32>
    %98 = vector.broadcast %31 : vector<1x32xf32> to vector<8x32xf32>
    %99 = arith.mulf %97, %98 : vector<8x32xf32>
    %100 = vector.broadcast %32 : vector<1x32xf32> to vector<8x32xf32>
    %101 = arith.addf %99, %100 : vector<8x32xf32>
    %c0_30 = arith.constant 0 : index
    %c0_31 = arith.constant 0 : index
    %c0_32 = arith.constant 0 : index
    %102 = vector.load %arg5[%c0_30, %c0_31, %c0_32] : memref<2x32x128xf32, #tpu.memory_space<vmem>>, vector<1x32x128xf32>
    %103 = vector.shape_cast %102 : vector<1x32x128xf32> to vector<32x128xf32>
    %cst_33 = arith.constant dense<0.000000e+00> : vector<8x128xf32>
    %104 = tpu.matmul %101, %103, %cst_33 {dimension_numbers = #tpu.dot_dimension_numbers<[1], [0], [0], [1], [0, 0, 1, 1], [], []>} : vector<8x32xf32>, vector<32x128xf32>, vector<8x128xf32> -> vector<8x128xf32>
    %105 = vector.broadcast %29 : vector<1x128xf32> to vector<8x128xf32>
    %106 = arith.addf %104, %105 : vector<8x128xf32>
    %107 = arith.mulf %106, %106 : vector<8x128xf32>
    %108 = arith.mulf %106, %107 : vector<8x128xf32>
    %cst_34 = arith.constant 4.471500e-02 : f32
    %109 = vector.broadcast %cst_34 : f32 to vector<8x128xf32>
    %110 = arith.mulf %109, %108 : vector<8x128xf32>
    %111 = arith.addf %106, %110 : vector<8x128xf32>
    %cst_35 = arith.constant 0.797884583 : f32
    %112 = vector.broadcast %cst_35 : f32 to vector<8x128xf32>
    %113 = arith.mulf %112, %111 : vector<8x128xf32>
    %114 = math.tanh %113 : vector<8x128xf32>
    %cst_36 = arith.constant 1.000000e+00 : f32
    %115 = vector.broadcast %cst_36 : f32 to vector<8x128xf32>
    %116 = arith.addf %115, %114 : vector<8x128xf32>
    %cst_37 = arith.constant 5.000000e-01 : f32
    %117 = vector.broadcast %cst_37 : f32 to vector<8x128xf32>
    %118 = arith.mulf %117, %116 : vector<8x128xf32>
    %119 = arith.mulf %106, %118 : vector<8x128xf32>
    %c0_38 = arith.constant 0 : index
    %c0_39 = arith.constant 0 : index
    %c0_40 = arith.constant 0 : index
    %120 = vector.load %arg6[%c0_38, %c0_39, %c0_40] : memref<2x128x32xf32, #tpu.memory_space<vmem>>, vector<1x128x32xf32>
    %121 = vector.shape_cast %120 : vector<1x128x32xf32> to vector<128x32xf32>
    %cst_41 = arith.constant dense<0.000000e+00> : vector<8x32xf32>
    %122 = tpu.matmul %119, %121, %cst_41 {dimension_numbers = #tpu.dot_dimension_numbers<[1], [0], [0], [1], [0, 0, 1, 1], [], []>} : vector<8x128xf32>, vector<128x32xf32>, vector<8x32xf32> -> vector<8x32xf32>
    %123 = vector.broadcast %33 : vector<1x32xf32> to vector<8x32xf32>
    %124 = arith.addf %122, %123 : vector<8x32xf32>
    %125 = arith.addf %101, %124 : vector<8x32xf32>
    %cst_42 = arith.constant dense<0.000000e+00> : vector<8xf32>
    %126 = vector.multi_reduction <add>, %125, %cst_42 [1] : vector<8x32xf32> to vector<8xf32>
    %127 = vector.shape_cast %126 : vector<8xf32> to vector<8x1xf32>
    %cst_43 = arith.constant 3.200000e+01 : f32
    %128 = vector.broadcast %cst_43 : f32 to vector<8x1xf32>
    %129 = arith.divf %127, %128 : vector<8x1xf32>
    %130 = vector.broadcast %129 : vector<8x1xf32> to vector<8x32xf32>
    %131 = arith.subf %125, %130 : vector<8x32xf32>
    %132 = arith.mulf %131, %131 : vector<8x32xf32>
    %cst_44 = arith.constant dense<0.000000e+00> : vector<8xf32>
    %133 = vector.multi_reduction <add>, %132, %cst_44 [1] : vector<8x32xf32> to vector<8xf32>
    %134 = vector.shape_cast %133 : vector<8xf32> to vector<8x1xf32>
    %cst_45 = arith.constant 3.200000e+01 : f32
    %135 = vector.broadcast %cst_45 : f32 to vector<8x1xf32>
    %136 = arith.divf %134, %135 : vector<8x1xf32>
    %137 = vector.broadcast %129 : vector<8x1xf32> to vector<8x32xf32>
    %138 = arith.subf %125, %137 : vector<8x32xf32>
    %cst_46 = arith.constant 9.99999996E-13 : f32
    %139 = vector.broadcast %cst_46 : f32 to vector<8x1xf32>
    %140 = arith.addf %136, %139 : vector<8x1xf32>
    %141 = math.rsqrt %140 : vector<8x1xf32>
    %142 = vector.broadcast %141 : vector<8x1xf32> to vector<8x32xf32>
    %143 = arith.mulf %138, %142 : vector<8x32xf32>
    %144 = vector.broadcast %34 : vector<1x32xf32> to vector<8x32xf32>
    %145 = arith.mulf %143, %144 : vector<8x32xf32>
    %146 = vector.broadcast %35 : vector<1x32xf32> to vector<8x32xf32>
    %147 = arith.addf %145, %146 : vector<8x32xf32>
    %c1_47 = arith.constant 1 : index
    %c0_48 = arith.constant 0 : index
    %c0_49 = arith.constant 0 : index
    %148 = vector.load %arg7[%c1_47, %c0_48, %c0_49] : memref<2x8x128xf32, #tpu.memory_space<vmem>>, vector<1x8x128xf32>
    %149 = vector.shape_cast %148 : vector<1x8x128xf32> to vector<8x128xf32>
    %150 = vector.extract_strided_slice %149 {offsets = [0, 0], sizes = [1, 128], strides = [1, 1]} : vector<8x128xf32> to vector<1x128xf32>
    %151 = vector.extract_strided_slice %149 {offsets = [1, 0], sizes = [1, 128], strides = [1, 1]} : vector<8x128xf32> to vector<1x128xf32>
    %152 = vector.extract_strided_slice %149 {offsets = [2, 0], sizes = [1, 32], strides = [1, 1]} : vector<8x128xf32> to vector<1x32xf32>
    %153 = vector.extract_strided_slice %149 {offsets = [3, 0], sizes = [1, 32], strides = [1, 1]} : vector<8x128xf32> to vector<1x32xf32>
    %154 = vector.extract_strided_slice %149 {offsets = [4, 0], sizes = [1, 32], strides = [1, 1]} : vector<8x128xf32> to vector<1x32xf32>
    %155 = vector.extract_strided_slice %149 {offsets = [5, 0], sizes = [1, 32], strides = [1, 1]} : vector<8x128xf32> to vector<1x32xf32>
    %156 = vector.extract_strided_slice %149 {offsets = [6, 0], sizes = [1, 32], strides = [1, 1]} : vector<8x128xf32> to vector<1x32xf32>
    %157 = vector.extract_strided_slice %149 {offsets = [7, 0], sizes = [1, 32], strides = [1, 1]} : vector<8x128xf32> to vector<1x32xf32>
    %c1_50 = arith.constant 1 : index
    %c0_51 = arith.constant 0 : index
    %c0_52 = arith.constant 0 : index
    %158 = vector.load %arg3[%c1_50, %c0_51, %c0_52] : memref<2x32x128xf32, #tpu.memory_space<vmem>>, vector<1x32x128xf32>
    %159 = vector.shape_cast %158 : vector<1x32x128xf32> to vector<32x128xf32>
    %cst_53 = arith.constant dense<0.000000e+00> : vector<8x128xf32>
    %160 = tpu.matmul %147, %159, %cst_53 {dimension_numbers = #tpu.dot_dimension_numbers<[1], [0], [0], [1], [0, 0, 1, 1], [], []>} : vector<8x32xf32>, vector<32x128xf32>, vector<8x128xf32> -> vector<8x128xf32>
    %161 = vector.broadcast %150 : vector<1x128xf32> to vector<8x128xf32>
    %162 = arith.addf %160, %161 : vector<8x128xf32>
    %163 = vector.extract_strided_slice %162 {offsets = [0, 0], sizes = [8, 8], strides = [1, 1]} : vector<8x128xf32> to vector<8x8xf32>
    %164 = vector.extract_strided_slice %162 {offsets = [0, 8], sizes = [8, 8], strides = [1, 1]} : vector<8x128xf32> to vector<8x8xf32>
    %165 = vector.extract_strided_slice %162 {offsets = [0, 16], sizes = [8, 8], strides = [1, 1]} : vector<8x128xf32> to vector<8x8xf32>
    %166 = vector.extract_strided_slice %162 {offsets = [0, 24], sizes = [8, 8], strides = [1, 1]} : vector<8x128xf32> to vector<8x8xf32>
    %167 = tpu.concatenate %163, %164, %165, %166 in 0 : vector<8x8xf32>, vector<8x8xf32>, vector<8x8xf32>, vector<8x8xf32> -> vector<32x8xf32>
    %168 = vector.extract_strided_slice %162 {offsets = [0, 32], sizes = [8, 8], strides = [1, 1]} : vector<8x128xf32> to vector<8x8xf32>
    %169 = vector.extract_strided_slice %162 {offsets = [0, 40], sizes = [8, 8], strides = [1, 1]} : vector<8x128xf32> to vector<8x8xf32>
    %170 = vector.extract_strided_slice %162 {offsets = [0, 48], sizes = [8, 8], strides = [1, 1]} : vector<8x128xf32> to vector<8x8xf32>
    %171 = vector.extract_strided_slice %162 {offsets = [0, 56], sizes = [8, 8], strides = [1, 1]} : vector<8x128xf32> to vector<8x8xf32>
    %172 = tpu.concatenate %168, %169, %170, %171 in 0 : vector<8x8xf32>, vector<8x8xf32>, vector<8x8xf32>, vector<8x8xf32> -> vector<32x8xf32>
    %173 = vector.extract_strided_slice %162 {offsets = [0, 64], sizes = [8, 8], strides = [1, 1]} : vector<8x128xf32> to vector<8x8xf32>
    %174 = vector.extract_strided_slice %162 {offsets = [0, 72], sizes = [8, 8], strides = [1, 1]} : vector<8x128xf32> to vector<8x8xf32>
    %175 = vector.extract_strided_slice %162 {offsets = [0, 80], sizes = [8, 8], strides = [1, 1]} : vector<8x128xf32> to vector<8x8xf32>
    %176 = vector.extract_strided_slice %162 {offsets = [0, 88], sizes = [8, 8], strides = [1, 1]} : vector<8x128xf32> to vector<8x8xf32>
    %177 = tpu.concatenate %173, %174, %175, %176 in 0 : vector<8x8xf32>, vector<8x8xf32>, vector<8x8xf32>, vector<8x8xf32> -> vector<32x8xf32>
    %cst_54 = arith.constant dense<0.000000e+00> : vector<32x32xf32>
    %178 = tpu.matmul %167, %172, %cst_54 {dimension_numbers = #tpu.dot_dimension_numbers<[1], [1], [0], [0], [0, 0, 1, 0], [], []>} : vector<32x8xf32>, vector<32x8xf32>, vector<32x32xf32> -> vector<32x32xf32>
    %179 = arith.addf %178, %0 : vector<32x32xf32>
    %cst_55 = arith.constant dense<0xFF800000> : vector<32xf32>
    %180 = vector.multi_reduction <maximumf>, %179, %cst_55 [1] : vector<32x32xf32> to vector<32xf32>
    %181 = vector.shape_cast %180 : vector<32xf32> to vector<32x1xf32>
    %182 = vector.broadcast %181 : vector<32x1xf32> to vector<32x32xf32>
    %183 = arith.subf %179, %182 : vector<32x32xf32>
    %184 = math.exp %183 : vector<32x32xf32>
    %cst_56 = arith.constant dense<0.000000e+00> : vector<32xf32>
    %185 = vector.multi_reduction <add>, %184, %cst_56 [1] : vector<32x32xf32> to vector<32xf32>
    %186 = vector.shape_cast %185 : vector<32xf32> to vector<32x1xf32>
    %187 = tpu.reciprocal %186 {approx = true} : vector<32x1xf32> -> vector<32x1xf32>
    %188 = vector.broadcast %187 : vector<32x1xf32> to vector<32x32xf32>
    %189 = arith.mulf %184, %188 : vector<32x32xf32>
    %cst_57 = arith.constant dense<0.000000e+00> : vector<32x8xf32>
    %190 = tpu.matmul %189, %177, %cst_57 {dimension_numbers = #tpu.dot_dimension_numbers<[1], [0], [0], [1], [0, 0, 1, 1], [], []>} : vector<32x32xf32>, vector<32x8xf32>, vector<32x8xf32> -> vector<32x8xf32>
    %191 = vector.extract_strided_slice %190 {offsets = [0, 0], sizes = [8, 8], strides = [1, 1]} : vector<32x8xf32> to vector<8x8xf32>
    %192 = vector.extract_strided_slice %190 {offsets = [8, 0], sizes = [8, 8], strides = [1, 1]} : vector<32x8xf32> to vector<8x8xf32>
    %193 = vector.extract_strided_slice %190 {offsets = [16, 0], sizes = [8, 8], strides = [1, 1]} : vector<32x8xf32> to vector<8x8xf32>
    %194 = vector.extract_strided_slice %190 {offsets = [24, 0], sizes = [8, 8], strides = [1, 1]} : vector<32x8xf32> to vector<8x8xf32>
    %195 = tpu.concatenate %191, %192, %193, %194 in 1 : vector<8x8xf32>, vector<8x8xf32>, vector<8x8xf32>, vector<8x8xf32> -> vector<8x32xf32>
    %c1_58 = arith.constant 1 : index
    %c0_59 = arith.constant 0 : index
    %c0_60 = arith.constant 0 : index
    %196 = vector.load %arg4[%c1_58, %c0_59, %c0_60] : memref<2x32x32xf32, #tpu.memory_space<vmem>>, vector<1x32x32xf32>
    %197 = vector.shape_cast %196 : vector<1x32x32xf32> to vector<32x32xf32>
    %cst_61 = arith.constant dense<0.000000e+00> : vector<8x32xf32>
    %198 = tpu.matmul %195, %197, %cst_61 {dimension_numbers = #tpu.dot_dimension_numbers<[1], [0], [0], [1], [0, 0, 1, 1], [], []>} : vector<8x32xf32>, vector<32x32xf32>, vector<8x32xf32> -> vector<8x32xf32>
    %199 = vector.broadcast %152 : vector<1x32xf32> to vector<8x32xf32>
    %200 = arith.addf %198, %199 : vector<8x32xf32>
    %201 = arith.addf %147, %200 : vector<8x32xf32>
    %cst_62 = arith.constant dense<0.000000e+00> : vector<8xf32>
    %202 = vector.multi_reduction <add>, %201, %cst_62 [1] : vector<8x32xf32> to vector<8xf32>
    %203 = vector.shape_cast %202 : vector<8xf32> to vector<8x1xf32>
    %cst_63 = arith.constant 3.200000e+01 : f32
    %204 = vector.broadcast %cst_63 : f32 to vector<8x1xf32>
    %205 = arith.divf %203, %204 : vector<8x1xf32>
    %206 = vector.broadcast %205 : vector<8x1xf32> to vector<8x32xf32>
    %207 = arith.subf %201, %206 : vector<8x32xf32>
    %208 = arith.mulf %207, %207 : vector<8x32xf32>
    %cst_64 = arith.constant dense<0.000000e+00> : vector<8xf32>
    %209 = vector.multi_reduction <add>, %208, %cst_64 [1] : vector<8x32xf32> to vector<8xf32>
    %210 = vector.shape_cast %209 : vector<8xf32> to vector<8x1xf32>
    %cst_65 = arith.constant 3.200000e+01 : f32
    %211 = vector.broadcast %cst_65 : f32 to vector<8x1xf32>
    %212 = arith.divf %210, %211 : vector<8x1xf32>
    %213 = vector.broadcast %205 : vector<8x1xf32> to vector<8x32xf32>
    %214 = arith.subf %201, %213 : vector<8x32xf32>
    %cst_66 = arith.constant 9.99999996E-13 : f32
    %215 = vector.broadcast %cst_66 : f32 to vector<8x1xf32>
    %216 = arith.addf %212, %215 : vector<8x1xf32>
    %217 = math.rsqrt %216 : vector<8x1xf32>
    %218 = vector.broadcast %217 : vector<8x1xf32> to vector<8x32xf32>
    %219 = arith.mulf %214, %218 : vector<8x32xf32>
    %220 = vector.broadcast %153 : vector<1x32xf32> to vector<8x32xf32>
    %221 = arith.mulf %219, %220 : vector<8x32xf32>
    %222 = vector.broadcast %154 : vector<1x32xf32> to vector<8x32xf32>
    %223 = arith.addf %221, %222 : vector<8x32xf32>
    %c1_67 = arith.constant 1 : index
    %c0_68 = arith.constant 0 : index
    %c0_69 = arith.constant 0 : index
    %224 = vector.load %arg5[%c1_67, %c0_68, %c0_69] : memref<2x32x128xf32, #tpu.memory_space<vmem>>, vector<1x32x128xf32>
    %225 = vector.shape_cast %224 : vector<1x32x128xf32> to vector<32x128xf32>
    %cst_70 = arith.constant dense<0.000000e+00> : vector<8x128xf32>
    %226 = tpu.matmul %223, %225, %cst_70 {dimension_numbers = #tpu.dot_dimension_numbers<[1], [0], [0], [1], [0, 0, 1, 1], [], []>} : vector<8x32xf32>, vector<32x128xf32>, vector<8x128xf32> -> vector<8x128xf32>
    %227 = vector.broadcast %151 : vector<1x128xf32> to vector<8x128xf32>
    %228 = arith.addf %226, %227 : vector<8x128xf32>
    %229 = arith.mulf %228, %228 : vector<8x128xf32>
    %230 = arith.mulf %228, %229 : vector<8x128xf32>
    %cst_71 = arith.constant 4.471500e-02 : f32
    %231 = vector.broadcast %cst_71 : f32 to vector<8x128xf32>
    %232 = arith.mulf %231, %230 : vector<8x128xf32>
    %233 = arith.addf %228, %232 : vector<8x128xf32>
    %cst_72 = arith.constant 0.797884583 : f32
    %234 = vector.broadcast %cst_72 : f32 to vector<8x128xf32>
    %235 = arith.mulf %234, %233 : vector<8x128xf32>
    %236 = math.tanh %235 : vector<8x128xf32>
    %cst_73 = arith.constant 1.000000e+00 : f32
    %237 = vector.broadcast %cst_73 : f32 to vector<8x128xf32>
    %238 = arith.addf %237, %236 : vector<8x128xf32>
    %cst_74 = arith.constant 5.000000e-01 : f32
    %239 = vector.broadcast %cst_74 : f32 to vector<8x128xf32>
    %240 = arith.mulf %239, %238 : vector<8x128xf32>
    %241 = arith.mulf %228, %240 : vector<8x128xf32>
    %c1_75 = arith.constant 1 : index
    %c0_76 = arith.constant 0 : index
    %c0_77 = arith.constant 0 : index
    %242 = vector.load %arg6[%c1_75, %c0_76, %c0_77] : memref<2x128x32xf32, #tpu.memory_space<vmem>>, vector<1x128x32xf32>
    %243 = vector.shape_cast %242 : vector<1x128x32xf32> to vector<128x32xf32>
    %cst_78 = arith.constant dense<0.000000e+00> : vector<8x32xf32>
    %244 = tpu.matmul %241, %243, %cst_78 {dimension_numbers = #tpu.dot_dimension_numbers<[1], [0], [0], [1], [0, 0, 1, 1], [], []>} : vector<8x128xf32>, vector<128x32xf32>, vector<8x32xf32> -> vector<8x32xf32>
    %245 = vector.broadcast %155 : vector<1x32xf32> to vector<8x32xf32>
    %246 = arith.addf %244, %245 : vector<8x32xf32>
    %247 = arith.addf %223, %246 : vector<8x32xf32>
    %cst_79 = arith.constant dense<0.000000e+00> : vector<8xf32>
    %248 = vector.multi_reduction <add>, %247, %cst_79 [1] : vector<8x32xf32> to vector<8xf32>
    %249 = vector.shape_cast %248 : vector<8xf32> to vector<8x1xf32>
    %cst_80 = arith.constant 3.200000e+01 : f32
    %250 = vector.broadcast %cst_80 : f32 to vector<8x1xf32>
    %251 = arith.divf %249, %250 : vector<8x1xf32>
    %252 = vector.broadcast %251 : vector<8x1xf32> to vector<8x32xf32>
    %253 = arith.subf %247, %252 : vector<8x32xf32>
    %254 = arith.mulf %253, %253 : vector<8x32xf32>
    %cst_81 = arith.constant dense<0.000000e+00> : vector<8xf32>
    %255 = vector.multi_reduction <add>, %254, %cst_81 [1] : vector<8x32xf32> to vector<8xf32>
    %256 = vector.shape_cast %255 : vector<8xf32> to vector<8x1xf32>
    %cst_82 = arith.constant 3.200000e+01 : f32
    %257 = vector.broadcast %cst_82 : f32 to vector<8x1xf32>
    %258 = arith.divf %256, %257 : vector<8x1xf32>
    %259 = vector.broadcast %251 : vector<8x1xf32> to vector<8x32xf32>
    %260 = arith.subf %247, %259 : vector<8x32xf32>
    %cst_83 = arith.constant 9.99999996E-13 : f32
    %261 = vector.broadcast %cst_83 : f32 to vector<8x1xf32>
    %262 = arith.addf %258, %261 : vector<8x1xf32>
    %263 = math.rsqrt %262 : vector<8x1xf32>
    %264 = vector.broadcast %263 : vector<8x1xf32> to vector<8x32xf32>
    %265 = arith.mulf %260, %264 : vector<8x32xf32>
    %266 = vector.broadcast %156 : vector<1x32xf32> to vector<8x32xf32>
    %267 = arith.mulf %265, %266 : vector<8x32xf32>
    %268 = vector.broadcast %157 : vector<1x32xf32> to vector<8x32xf32>
    %269 = arith.addf %267, %268 : vector<8x32xf32>
    %c0_84 = arith.constant 0 : index
    %c0_85 = arith.constant 0 : index
    %270 = vector.load %arg8[%c0_84, %c0_85] : memref<8x32xf32, #tpu.memory_space<vmem>>, vector<8x32xf32>
    tpu.vector_store %arg8[%c0_84, %c0_85], %269 {strides = array<i32>} : memref<8x32xf32, #tpu.memory_space<vmem>>, vector<8x32xf32>,
    return
  }
}

</mosaic_0001>

<bundles_post_ra>
// kernel: encoder_forward.1
= control target key start
LH: loop header
LB: loop body
LE: loop exit
PB: predicated region body
PF: predicated region fallthrough
CT: control target
= control target key end

     0   :  { %vm37_vm0 = vcmask 261120   ;;  %s2533_s0 = inlined_call_operand.vmem [shape: f32[8,32], index: 0, kind: input, shape index: {}]   ;;  %s2534_s1 = inlined_call_operand.vmem [shape: f32[2,32], index: 1, kind: input, shape index: {}]   ;;  %s2535_s2 = inlined_call_operand.vmem [shape: f32[32,32], index: 2, kind: input, shape index: {}]   ;;  %s2536_s3 = inlined_call_operand.vmem [shape: f32[2,32,128], index: 3, kind: input, shape index: {}]   ;;  %s2537_s4 = inlined_call_operand.vmem [shape: f32[2,32,32], index: 4, kind: input, shape index: {}]   ;;  %s2538_s5 = inlined_call_operand.vmem [shape: f32[2,32,128], index: 5, kind: input, shape index: {}]   ;;  %s2539_s6 = inlined_call_operand.vmem [shape: f32[2,128,32], index: 6, kind: input, shape index: {}]   ;;  %s2540_s7 = inlined_call_operand.vmem [shape: f32[2,8,128], index: 7, kind: input, shape index: {}]   ;;  %s2541_s8 = inlined_call_operand.hbm [shape: f32[8,32], index: 8, kind: output, shape index: {}]  }
   0x1   :  { %v34_v0 = vld [vmem:[%s2533_s0] sm:$0xff] }
   0x2   :  { %13 = vsyncpa [#allocation3], 0  ;;  %v38_v1 = vsel %vm37_vm0, %v34_v0, 0.0  ;;  %v63_v7 = vld [vmem:[%s2536_s3] sm:$0xff]  ;;  %v64_v8 = vld [vmem:[%s2536_s3 + $0x8] sm:$0xff]  ;;  %v2030_v10 = vmov 0.0|0.0   ;;  %v67_v24 = vlaneseq }
   0x3   :  { %39 = vadd.xlane.f32.xlu0 %v38_v1  ;;  %v65_v9 = vld [vmem:[%s2536_s3 + $0x10] sm:$0xff]  ;;  %1784 = vmatprep.subr.bf16.mxu1 %v2030_v10  ;;  %v1785_v11 = vpack.c.bf16 %v64_v8, %v63_v7  ;;  %v66_v12 = vld [vmem:[%s2536_s3 + $0x18] sm:$0xff]  ;;  %vm2031_vm1 = vmmov 0   ;;  %v2032_v13 = vmov 0.0   ;;  %v1435_v19 = vld [vmem:[%s2534_s1] ss:$0 sm:$0xff] }
   0x4   :  { %1600 = vmatprep.mubr.msk.f32.mxu1 %vm2031_vm1, %v2032_v13  ;;  %1810 = vmatprep.subr.bf16.mxu0 %v2030_v10  ;;  %v1788_v14 = vpack.c.bf16 %v66_v12, %v65_v9  ;;  %v1436_v21 = vld [vmem:[%s2534_s1 + $0x1] ss:$0 sm:$0xff]  ;;  %v2121_v25 = vshrl.u32 %v67_v24, 7  ;;  %vm159_vm2 = vcmask 64512   ;;  %s2033_s1 = smov 104   ;;  %s2034_s20 = smov 120  }
   0x5   :  { %1639 = vmatprep.mubr.msk.f32.mxu0 %vm2031_vm1, %v2032_v13  ;;  %1786 = vmatpush3.bf16.msra.mxu1 %v1785_v11  ;;  %v2127_v27 = vld [vmem:[%s2540_s7] sm:$0xff]  ;;  %s2035_s21 = smov 112   ;;  %s2036_s22 = smov 96   ;;  %vm2146_vm3 = vmpackc.low %vm159_vm2, %vm159_vm2  ;;  %v2164_v46 = vld [vmem:[%s2535_s2 + $0x8] sm:$0xff]  ;;  %vm427_vm4 = vcmask 130048   ;;  %vm429_vm5 = vcmask 195584  }
   0x6   :  { %1787 = vmatprep.subr.bf16.mxu1 %v2030_v10  ;;  %v69_v26 = vsub.s32 0, %v2121_v25  ;;  %v2169_v47 = vld [vmem:[%s2535_s2] sm:$0xff]  ;;  %v2177_v53 = vld [vmem:[%s2535_s2 + $0x10] sm:$0xff]  ;;  %v2183_v56 = vld [vmem:[%s2535_s2 + $0x18] sm:$0xff]  ;;  %s2037_s2 = smov 64   ;;  %s2038_s16 = smov 8  }
   0x7   :  { %s2039_s17 = smov 24   ;;  %s2040_s18 = smov 16  }
   0x8   :  { %v70_v28 = vrot.slane %v2127_v27, %v69_v26 }
   0x9   :  { %1789 = vmatpush3.bf16.msra.mxu1 %v1788_v14 }
  0x90   :  { %v40_v2 = vpop.xlane.xlu0 %39 }
  0x91   :  { %v42_v3 = vmul.f32 0.03125, %v40_v2 }
  0x93   :  { %v43_v4 = vsub.f32 %v34_v0, %v42_v3 }
  0x95   :  { %v44_v5 = vmul.f32 %v43_v4, %v43_v4 }
  0x97   :  { %v45_v6 = vsel %vm37_vm0, %v44_v5, 0.0 }
  0x98   :  { %46 = vadd.xlane.f32.xlu0 %v45_v6 }
 0x125   :  { %v47_v15 = vpop.xlane.xlu0 %46 }
 0x126   :  { %v48_v16 = vmul.f32 0.03125, %v47_v15 }
 0x128   :  { %v49_v17 = vadd.f32 1e-12, %v48_v16 }
 0x12a   :  { %1960 = vrsqrt.f32 %v49_v17 }
 0x134   :  { %v1961_v18 = vpop.eup %1960 }
 0x135   :  { %v51_v20 = vmul.f32 %v1961_v18, %v43_v4 }
 0x137   :  { %v56_v22 = vmul.f32 %v1435_v19, %v51_v20 }
 0x139   :  { %v2117_v23 = vadd.f32 %v1436_v21, %v56_v22 }
 0x13b   :  { %1601 = vmatmul.mubr.msk.f32.vlgmr.msra.gmra.mrb[0].mxu1 %vm37_vm0, %v2117_v23 }
 0x20e   :  { %v140_v29 = vpop.f32.mrb[0].mxu1 }
 0x20f   :  { %v141_v30 = vadd.f32 %v140_v29, %v70_v28  ;;  %v1602_v31 = vpop.f32.mrb[1].mxu1 }
 0x211   :  { %149 = vrot.lane.b32.xlu0 %v141_v30, %s2033_s1  ;;  %145 = vrot.lane.b32.xlu1 %v141_v30, %s2034_s20 }
 0x212   :  { %1611 = vmatprep.mubr.msk.f32.mxu1 %vm159_vm2, %v141_v30 }
 0x215   :  { %147 = vrot.lane.b32.xlu1 %v141_v30, %s2035_s21 }
 0x283   :  { %v146_v32 = vpop.permute.xlu1 %145  ;;  %v150_v34 = vpop.permute.xlu0 %149 }
 0x284   :  { %v2136_v33 = vpack.i.bf16 %v146_v32, %v141_v30 }
 0x286   :  { %1921 = vrot.lane.b32.xlu1 %v2136_v33, %s2036_s22 }
 0x287   :  { %v148_v35 = vpop.permute.xlu1 %147 }
 0x288   :  { %v2140_v36 = vpack.i.bf16 %v150_v34, %v148_v35 }
 0x28a   :  { %1926 = vrot.lane.b32.xlu1 %v2140_v36, %s2036_s22 }
 0x2f8   :  { %v1922_v37 = vpop.permute.xlu1 %1921 }
 0x2f9   :  { %v1924_v38 = vunpack.i.h.bf16 %v1922_v37  ;;  %v1923_v39 = vunpack.i.l.bf16 %v1922_v37 }
 0x2fb   :  { %v1790_v41 = vpack.c.bf16 %v1924_v38, %v1923_v39 }
 0x2fc   :  { %v1927_v42 = vpop.permute.xlu1 %1926 }
 0x2fd   :  { %v1929_v43 = vunpack.i.h.bf16 %v1927_v42  ;;  %v1928_v44 = vunpack.i.l.bf16 %v1927_v42  ;;  %1792 = vmatprep.subr.msk.bf16.mxu1 %vm2146_vm3, %v1790_v41 }
 0x2fe   :  { %1795 = vmatpush3.bf16.xpose.msk.msra.mxu1 %vm2146_vm3, %v1790_v41 }
 0x2ff   :  { %v1796_v45 = vpack.c.bf16 %v1929_v43, %v1928_v44 }
 0x301   :  { %1798 = vmatprep.subr.msk.bf16.mxu1 %vm2146_vm3, %v1796_v45 }
 0x306   :  { %1801 = vmatpush3.bf16.xpose.msk.msra.mxu1 %vm2146_vm3, %v1796_v45  ;;  %v431_v45 = vld [vmem:[%s2537_s4] sm:$0xff] }
 0x30d   :  { %1612 = vmatmul.mubr.msk.f32.vlgmr.msra.gmra.mrb[2].mxu1 %vm159_vm2, %v146_v32 }
 0x30e   :  { %1614 = vmatprep.mubr.msk.f32.mxu1 %vm159_vm2, %v148_v35 }
 0x311   :  { %1615 = vmatmul.mubr.msk.f32.gmra.mrb[4].mxu1 %vm159_vm2, %v150_v34 }
 0x3e0   :  { %v1613_v48 = vpop.f32.mrb[2].mxu1 }
 0x3e1   :  { %v248_v49 = vadd.f32 %v1613_v48, %v2164_v46  ;;  %v242_v50 = vpop.f32.mrb[3].mxu1  ;;  %v432_v48 = vld [vmem:[%s2537_s4 + $0x8] sm:$0xff] }
 0x3e2   :  { %v243_v51 = vadd.f32 %v242_v50, %v2169_v47  ;;  %v433_v50 = vld [vmem:[%s2537_s4 + $0x10] sm:$0xff] }
 0x3e3   :  { %v264_v52 = vsel %vm37_vm0, %v248_v49, -inf }
 0x3e4   :  { %v1616_v54 = vpop.f32.mrb[4].mxu1  ;;  %265 = vmax.xlane.f32.xlu0 %v264_v52  ;;  %v261_v55 = vsel %vm37_vm0, %v243_v51, -inf }
 0x3e5   :  { %v252_v57 = vpop.f32.mrb[5].mxu1  ;;  %262 = vmax.xlane.f32.xlu1 %v261_v55  ;;  %v258_v59 = vadd.f32 %v1616_v54, %v2183_v56 }
 0x3e6   :  { %v253_v58 = vadd.f32 %v252_v57, %v2177_v53 }
 0x3e7   :  { %v270_v61 = vsel %vm37_vm0, %v258_v59, -inf }
 0x3e8   :  { %v267_v60 = vsel %vm37_vm0, %v253_v58, -inf }
 0x3e9   :  { %268 = vmax.xlane.f32.xlu1 %v267_v60 }
 0x3ed   :  { %271 = vmax.xlane.f32.xlu1 %v270_v61 }
 0x471   :  { %v266_v62 = vpop.xlane.xlu0 %265 }
 0x472   :  { %v274_v63 = vsub.f32 %v248_v49, %v266_v62  ;;  %v263_v0 = vpop.xlane.xlu1 %262  ;;  %v1811_v49 = vpack.c.bf16 %v432_v48, %v431_v45  ;;  %v632_v45 = vld [vmem:[%s2539_s6 + $0x30] sm:$0xff]  ;;  %v633_v48 = vld [vmem:[%s2539_s6 + $0x38] sm:$0xff] }
 0x473   :  { %v273_v1 = vsub.f32 %v243_v51, %v263_v0  ;;  %v434_v51 = vld [vmem:[%s2537_s4 + $0x18] sm:$0xff] }
 0x474   :  { %v279_v2 = vmul.f32 1.442695, %v274_v63  ;;  %1812 = vmatpush3.bf16.msra.mxu0 %v1811_v49  ;;  %v1814_v52 = vpack.c.bf16 %v434_v51, %v433_v50  ;;  %v1832_v49 = vpack.c.bf16 %v633_v48, %v632_v45  ;;  %v634_v50 = vld [vmem:[%s2539_s6 + $0x40] sm:$0xff]  ;;  %v635_v51 = vld [vmem:[%s2539_s6 + $0x48] sm:$0xff]  ;;  %v737_v45 = vsub.s32 7, %v2121_v25 }
 0x475   :  { %v277_v3 = vmul.f32 1.442695, %v273_v1  ;;  %1813 = vmatprep.subr.bf16.mxu0 %v2030_v10  ;;  %v437_v1 = vsub.s32 2, %v2121_v25 }
 0x476   :  { %1962 = vpow2.f32 %v279_v2  ;;  %v269_v4 = vpop.xlane.xlu1 %268 }
 0x477   :  { %1964 = vpow2.f32 %v277_v3  ;;  %v275_v5 = vsub.f32 %v253_v58, %v269_v4  ;;  %v438_v2 = vrot.slane %v2127_v27, %v437_v1 }
 0x478   :  { %1815 = vmatpush3.bf16.msra.mxu0 %v1814_v52  ;;  %v636_v52 = vld [vmem:[%s2539_s6 + $0x50] sm:$0xff] }
 0x479   :  { %v281_v6 = vmul.f32 1.442695, %v275_v5  ;;  %1822 = vmatprep.subr.bf16.mxu0 %v2030_v10 }
 0x47a   :  { %v272_v7 = vpop.xlane.xlu1 %271 }
 0x47b   :  { %1966 = vpow2.f32 %v281_v6  ;;  %v276_v8 = vsub.f32 %v258_v59, %v272_v7 }
 0x47d   :  { %v283_v9 = vmul.f32 1.442695, %v276_v8 }
 0x47f   :  { %1968 = vpow2.f32 %v283_v9 }
 0x480   :  { %v1963_v11 = vpop.eup %1962 }
 0x481   :  { %v1965_v12 = vpop.eup %1964  ;;  %v288_v14 = vsel %vm37_vm0, %v1963_v11, 0.0 }
 0x482   :  { %289 = vadd.xlane.f32.xlu0 %v288_v14  ;;  %v285_v15 = vsel %vm37_vm0, %v1965_v12, 0.0 }
 0x483   :  { %286 = vadd.xlane.f32.xlu1 %v285_v15  ;;  %v536_v15 = vld [vmem:[%s2538_s5] sm:$0xff] }
 0x485   :  { %v1967_v16 = vpop.eup %1966 }
 0x486   :  { %v291_v17 = vsel %vm37_vm0, %v1967_v16, 0.0 }
 0x487   :  { %292 = vadd.xlane.f32.xlu1 %v291_v17 }
 0x489   :  { %v1969_v18 = vpop.eup %1968 }
 0x48a   :  { %v294_v19 = vsel %vm37_vm0, %v1969_v18, 0.0 }
 0x48b   :  { %295 = vadd.xlane.f32.xlu0 %v294_v19 }
 0x498   :  { %1931 = vrot.lane.b32.xlu1 %v2136_v33, %s2037_s2 }
 0x4a1   :  { %1936 = vrot.lane.b32.xlu0 %v2140_v36, %s2037_s2 }
 0x50f   :  { %v290_v21 = vpop.xlane.xlu0 %289 }
 0x510   :  { %v287_v20 = vpop.xlane.xlu1 %286 }
 0x511   :  { %1970 = vrcp.f32 %v287_v20  ;;  %v626_v20 = vld [vmem:[%s2539_s6] sm:$0xff] }
 0x512   :  { %1972 = vrcp.f32 %v290_v21  ;;  %v627_v21 = vld [vmem:[%s2539_s6 + $0x8] sm:$0xff] }
 0x514   :  { %v293_v22 = vpop.xlane.xlu1 %292 }
 0x515   :  { %1974 = vrcp.f32 %v293_v22  ;;  %v1823_v22 = vpack.c.bf16 %v627_v21, %v626_v20 }
 0x518   :  { %v1932_v24 = vpop.permute.xlu1 %1931  ;;  %v296_v28 = vpop.xlane.xlu0 %295 }
 0x519   :  { %v1934_v29 = vunpack.i.h.bf16 %v1932_v24  ;;  %v1933_v30 = vunpack.i.l.bf16 %v1932_v24  ;;  %1976 = vrcp.f32 %v296_v28 }
 0x51b   :  { %v1971_v31 = vpop.eup %1970  ;;  %v1802_v32 = vpack.c.bf16 %v1934_v29, %v1933_v30  ;;  %v528_v30 = vsub.s32 3, %v2121_v25 }
 0x51c   :  { %v1937_v34 = vpop.permute.xlu0 %1936  ;;  %v301_v35 = vmul.f32 %v1971_v31, %v1965_v12  ;;  %v1973_v38 = vpop.eup %1972  ;;  %v533_v31 = vsub.s32 4, %v2121_v25 }
 0x51d   :  { %v1939_v37 = vunpack.i.h.bf16 %v1937_v34  ;;  %v1938_v33 = vunpack.i.l.bf16 %v1937_v34  ;;  %1803 = vmatprep.subr.bf16.mxu1 %v1802_v32  ;;  %v302_v41 = vmul.f32 %v1973_v38, %v1963_v11  ;;  %v628_v38 = vld [vmem:[%s2539_s6 + $0x10] sm:$0xff] }
 0x51e   :  { %1805 = vmatpush3.bf16.msra.mxu1 %v1802_v32  ;;  %1625 = vmatprep.mubr.msk.f32.mxu1 %vm37_vm0, %v301_v35  ;;  %v529_v32 = vrot.slane %v2127_v27, %v528_v30  ;;  %v534_v35 = vrot.slane %v2127_v27, %v533_v31 }
 0x51f   :  { %v1806_v36 = vpack.c.bf16 %v1939_v37, %v1938_v33  ;;  %v1975_v39 = vpop.eup %1974 }
 0x520   :  { %v303_v43 = vmul.f32 %v1975_v39, %v1967_v16  ;;  %v537_v16 = vld [vmem:[%s2538_s5 + $0x8] sm:$0xff]  ;;  %v629_v39 = vld [vmem:[%s2539_s6 + $0x18] sm:$0xff] }
 0x521   :  { %1807 = vmatprep.subr.bf16.mxu1 %v1806_v36  ;;  %v1817_v17 = vpack.c.bf16 %v537_v16, %v536_v15 }
 0x522   :  { %1809 = vmatpush3.bf16.msra.mxu1 %v1806_v36 }
 0x523   :  { %1816 = vmatprep.subr.bf16.mxu1 %v2030_v10  ;;  %v1977_v42 = vpop.eup %1976 }
 0x524   :  { %v304_v44 = vmul.f32 %v1977_v42, %v1969_v18  ;;  %v539_v18 = vld [vmem:[%s2538_s5 + $0x18] sm:$0xff]  ;;  %v630_v42 = vld [vmem:[%s2539_s6 + $0x20] sm:$0xff] }
 0x525   :  { %1626 = vmatmul.mubr.msk.f32.vlgmr.msra.gmra.mrb[6].mxu1 %vm37_vm0, %v302_v41  ;;  %v1826_v41 = vpack.c.bf16 %v629_v39, %v628_v38  ;;  %v1456_v38 = vld [vmem:[%s2536_s3 + $0x38] sm:$0xff] }
 0x526   :  { %1628 = vmatprep.mubr.msk.f32.mxu1 %vm37_vm0, %v303_v43  ;;  %1818 = vmatpush3.bf16.msra.mxu1 %v1817_v17  ;;  %v631_v43 = vld [vmem:[%s2539_s6 + $0x28] sm:$0xff]  ;;  %v644_v17 = vsub.s32 5, %v2121_v25 }
 0x527   :  { %1819 = vmatprep.subr.bf16.mxu1 %v2030_v10 }
 0x529   :  { %1629 = vmatmul.mubr.msk.f32.gmra.mrb[8].mxu1 %vm37_vm0, %v304_v44  ;;  %v1829_v44 = vpack.c.bf16 %v631_v43, %v630_v42 }
 0x52a   :  { %1650 = vmatprep.mubr.msk.f32.mxu1 %vm2031_vm1, %v2032_v13 }
 0x5f8   :  { %v1627_v54 = vpop.f32.mrb[6].mxu1 }
 0x5f9   :  { %415 = vrot.lane.b32.xlu1 %v1627_v54, %s2038_s16  ;;  %v395_v55 = vpop.f32.mrb[7].mxu1  ;;  %v1835_v54 = vpack.c.bf16 %v635_v51, %v634_v50  ;;  %v738_v51 = vrot.slane %v2127_v27, %v737_v45 }
 0x5fc   :  { %v1630_v57 = vpop.f32.mrb[8].mxu1 }
 0x5fd   :  { %423 = vrot.lane.b32.xlu0 %v1630_v57, %s2039_s17  ;;  %v405_v58 = vpop.f32.mrb[9].mxu1 }
 0x5fe   :  { %419 = vrot.lane.b32.xlu1 %v405_v58, %s2040_s18  ;;  %v638_v58 = vld [vmem:[%s2539_s6 + $0x60] sm:$0xff] }
 0x66b   :  { %v416_v59 = vpop.permute.xlu1 %415 }
 0x66c   :  { %v426_v60 = vsel %vm159_vm2, %v395_v55, %v416_v59  ;;  %v637_v55 = vld [vmem:[%s2539_s6 + $0x58] sm:$0xff]  ;;  %v639_v59 = vld [vmem:[%s2539_s6 + $0x68] sm:$0xff] }
 0x66d   :  { %v1838_v57 = vpack.c.bf16 %v637_v55, %v636_v52  ;;  %v2355_v55 = vld [vmem:[%s2540_s7 + $0x8] sm:$0xff] }
 0x66f   :  { %v424_v62 = vpop.permute.xlu0 %423 }
 0x670   :  { %v420_v61 = vpop.permute.xlu1 %419 }
 0x671   :  { %v428_v63 = vsel %vm427_vm4, %v426_v60, %v420_v61  ;;  %v1841_v60 = vpack.c.bf16 %v639_v59, %v638_v58  ;;  %v640_v61 = vld [vmem:[%s2539_s6 + $0x70] sm:$0xff] }
 0x672   :  { %v430_v0 = vsel %vm429_vm5, %v428_v63, %v424_v62  ;;  %v641_v62 = vld [vmem:[%s2539_s6 + $0x78] sm:$0xff] }
 0x673   :  { %1640 = vmatmul.mubr.msk.f32.vlgmr.msra.gmra.mrb[0].mxu0 %vm37_vm0, %v430_v0  ;;  %v1844_v63 = vpack.c.bf16 %v641_v62, %v640_v61  ;;  %v542_v0 = vsub.s32 1, %v2121_v25 }
 0x674   :  { %1685 = vmatprep.mubr.msk.f32.mxu0 %vm2031_vm1, %v2032_v13  ;;  %1824 = vmatpush3.bf16.msra.mxu0 %v1823_v22 }
 0x675   :  { %1825 = vmatprep.subr.bf16.mxu0 %v2030_v10 }
 0x678   :  { %1827 = vmatpush3.bf16.msra.mxu0 %v1826_v41 }
 0x679   :  { %1828 = vmatprep.subr.bf16.mxu0 %v2030_v10 }
 0x67c   :  { %1830 = vmatpush3.bf16.msra.mxu0 %v1829_v44  ;;  %v732_v44 = vsub.s32 6, %v2121_v25 }
 0x67d   :  { %1831 = vmatprep.subr.bf16.mxu0 %v2030_v10 }
 0x67e   :  { %v733_v48 = vrot.slane %v2127_v27, %v732_v44 }
 0x680   :  { %1833 = vmatpush3.bf16.msra.mxu0 %v1832_v49 }
 0x681   :  { %1834 = vmatprep.subr.bf16.mxu0 %v2030_v10 }
 0x684   :  { %1836 = vmatpush3.bf16.msra.mxu0 %v1835_v54 }
 0x685   :  { %1837 = vmatprep.subr.bf16.mxu0 %v2030_v10 }
 0x688   :  { %1839 = vmatpush3.bf16.msra.mxu0 %v1838_v57  ;;  %v750_v57 = vrot.slane %v2355_v55, %v69_v26 }
 0x689   :  { %1840 = vmatprep.subr.bf16.mxu0 %v2030_v10 }
 0x68c   :  { %1842 = vmatpush3.bf16.msra.mxu0 %v1841_v60 }
 0x68d   :  { %1843 = vmatprep.subr.bf16.mxu0 %v2030_v10 }
 0x690   :  { %1845 = vmatpush3.bf16.msra.mxu0 %v1844_v63 }
 0x691   :  { %1872 = vmatprep.subr.bf16.mxu0 %v2030_v10 }
 0x746   :  { %v508_v3 = vpop.f32.mrb[0].mxu0 }
 0x747   :  { %v509_v4 = vadd.f32 %v508_v3, %v438_v2  ;;  %v1641_v5 = vpop.f32.mrb[1].mxu0  ;;  %v543_v2 = vrot.slane %v2127_v27, %v542_v0 }
 0x749   :  { %v512_v6 = vadd.f32 %v509_v4, %v2117_v23  ;;  %v538_v23 = vld [vmem:[%s2538_s5 + $0x10] sm:$0xff] }
 0x74a   :  { %v1820_v19 = vpack.c.bf16 %v539_v18, %v538_v23  ;;  %v645_v23 = vrot.slane %v2127_v27, %v644_v17 }
 0x74b   :  { %v513_v7 = vsel %vm37_vm0, %v512_v6, 0.0 }
 0x74c   :  { %514 = vadd.xlane.f32.xlu1 %v513_v7  ;;  %1821 = vmatpush3.bf16.msra.mxu1 %v1820_v19 }
 0x74d   :  { %1846 = vmatprep.subr.bf16.mxu1 %v2030_v10 }
 0x7d9   :  { %v515_v8 = vpop.xlane.xlu1 %514 }
 0x7da   :  { %v516_v9 = vmul.f32 0.03125, %v515_v8 }
 0x7dc   :  { %v517_v11 = vsub.f32 %v512_v6, %v516_v9 }
 0x7de   :  { %v518_v12 = vmul.f32 %v517_v11, %v517_v11 }
 0x7e0   :  { %v519_v14 = vsel %vm37_vm0, %v518_v12, 0.0 }
 0x7e1   :  { %520 = vadd.xlane.f32.xlu0 %v519_v14 }
 0x86e   :  { %v521_v24 = vpop.xlane.xlu0 %520 }
 0x86f   :  { %v522_v28 = vmul.f32 0.03125, %v521_v24 }
 0x871   :  { %v523_v29 = vadd.f32 1e-12, %v522_v28 }
 0x873   :  { %1978 = vrsqrt.f32 %v523_v29 }
 0x87d   :  { %v1979_v34 = vpop.eup %1978 }
 0x87e   :  { %v525_v37 = vmul.f32 %v1979_v34, %v517_v11 }
 0x880   :  { %v530_v33 = vmul.f32 %v529_v32, %v525_v37  ;;  %v1454_v37 = vld [vmem:[%s2536_s3 + $0x28] sm:$0xff] }
 0x882   :  { %v535_v36 = vadd.f32 %v534_v35, %v530_v33  ;;  %v1453_v35 = vld [vmem:[%s2536_s3 + $0x20] sm:$0xff] }
 0x883   :  { %v1847_v33 = vpack.c.bf16 %v1454_v37, %v1453_v35 }
 0x884   :  { %1651 = vmatmul.mubr.msk.f32.vlgmr.msra.gmra.mrb[10].mxu1 %vm37_vm0, %v535_v36 }
 0x885   :  { %1696 = vmatprep.mubr.msk.f32.mxu1 %vm2031_vm1, %v2032_v13  ;;  %1848 = vmatpush3.bf16.msra.mxu1 %v1847_v33 }
 0x886   :  { %1849 = vmatprep.subr.bf16.mxu1 %v2030_v10 }
 0x957   :  { %v613_v3 = vpop.f32.mrb[10].mxu1 }
 0x958   :  { %v614_v4 = vadd.f32 %v613_v3, %v543_v2  ;;  %v1652_v5 = vpop.f32.mrb[11].mxu1 }
 0x95a   :  { %v617_v6 = vmul.f32 %v614_v4, %v614_v4 }
 0x95c   :  { %v618_v7 = vmul.f32 %v617_v6, %v614_v4 }
 0x95e   :  { %v619_v8 = vmul.f32 0.044715, %v618_v7 }
 0x960   :  { %v620_v9 = vadd.f32 %v619_v8, %v614_v4 }
 0x962   :  { %v621_v11 = vmul.f32 0.7978846, %v620_v9 }
 0x964   :  { %1980 = vtanh.f32 %v621_v11 }
 0x96e   :  { %v1981_v12 = vpop.eup %1980 }
 0x96f   :  { %v623_v14 = vadd.f32 1.0, %v1981_v12 }
 0x971   :  { %v624_v15 = vmul.f32 0.5, %v623_v14 }
 0x973   :  { %v625_v16 = vmul.f32 %v624_v15, %v614_v4 }
 0x975   :  { %1686 = vmatmul.mubr.f32.vlgmr.msra.gmra.mrb[2].mxu0 %v625_v16 }
 0x976   :  { %1735 = vmatprep.mubr.msk.f32.mxu0 %vm2031_vm1, %v2032_v13 }
 0xa48   :  { %v712_v18 = vpop.f32.mrb[2].mxu0 }
 0xa49   :  { %v713_v19 = vadd.f32 %v712_v18, %v645_v23  ;;  %v1687_v20 = vpop.f32.mrb[3].mxu0 }
 0xa4b   :  { %v716_v21 = vadd.f32 %v713_v19, %v535_v36  ;;  %v1455_v36 = vld [vmem:[%s2536_s3 + $0x30] sm:$0xff] }
 0xa4c   :  { %v1850_v39 = vpack.c.bf16 %v1456_v38, %v1455_v36 }
 0xa4d   :  { %v717_v22 = vsel %vm37_vm0, %v716_v21, 0.0 }
 0xa4e   :  { %718 = vadd.xlane.f32.xlu0 %v717_v22  ;;  %1851 = vmatpush3.bf16.msra.mxu1 %v1850_v39 }
 0xadb   :  { %v719_v24 = vpop.xlane.xlu0 %718 }
 0xadc   :  { %v720_v28 = vmul.f32 0.03125, %v719_v24 }
 0xade   :  { %v721_v29 = vsub.f32 %v716_v21, %v720_v28 }
 0xae0   :  { %v722_v32 = vmul.f32 %v721_v29, %v721_v29 }
 0xae2   :  { %v723_v34 = vsel %vm37_vm0, %v722_v32, 0.0 }
 0xae3   :  { %724 = vadd.xlane.f32.xlu1 %v723_v34 }
 0xb70   :  { %v725_v41 = vpop.xlane.xlu1 %724 }
 0xb71   :  { %v726_v42 = vmul.f32 0.03125, %v725_v41 }
 0xb73   :  { %v727_v43 = vadd.f32 1e-12, %v726_v42 }
 0xb75   :  { %1982 = vrsqrt.f32 %v727_v43 }
 0xb7f   :  { %v1983_v49 = vpop.eup %1982 }
 0xb80   :  { %v729_v50 = vmul.f32 %v1983_v49, %v721_v29 }
 0xb82   :  { %v734_v52 = vmul.f32 %v733_v48, %v729_v50 }
 0xb84   :  { %v2348_v54 = vadd.f32 %v738_v51, %v734_v52 }
 0xb86   :  { %1697 = vmatmul.mubr.msk.f32.vlgmr.msra.gmra.mrb[12].mxu1 %vm37_vm0, %v2348_v54 }
 0xc59   :  { %v820_v58 = vpop.f32.mrb[12].mxu1 }
 0xc5a   :  { %v821_v59 = vadd.f32 %v820_v58, %v750_v57  ;;  %v1698_v60 = vpop.f32.mrb[13].mxu1 }
 0xc5c   :  { %827 = vrot.lane.b32.xlu1 %v821_v59, %s2035_s21  ;;  %825 = vrot.lane.b32.xlu0 %v821_v59, %s2034_s20 }
 0xc5d   :  { %1707 = vmatprep.mubr.msk.f32.mxu1 %vm159_vm2, %v821_v59 }
 0xc60   :  { %829 = vrot.lane.b32.xlu1 %v821_v59, %s2033_s1 }
 0xcce   :  { %v828_v27 = vpop.permute.xlu1 %827  ;;  %v826_v61 = vpop.permute.xlu0 %825 }
 0xccf   :  { %v2364_v62 = vpack.i.bf16 %v826_v61, %v821_v59 }
 0xcd1   :  { %1941 = vrot.lane.b32.xlu0 %v2364_v62, %s2036_s22 }
 0xcd2   :  { %v830_v63 = vpop.permute.xlu1 %829 }
 0xcd3   :  { %v1945_v26 = vpack.i.bf16 %v830_v63, %v828_v27 }
 0xcd5   :  { %1946 = vrot.lane.b32.xlu1 %v1945_v26, %s2036_s22 }
 0xd43   :  { %v1942_v2 = vpop.permute.xlu0 %1941 }
 0xd44   :  { %v1944_v3 = vunpack.i.h.bf16 %v1942_v2  ;;  %v1943_v4 = vunpack.i.l.bf16 %v1942_v2 }
 0xd46   :  { %v1852_v5 = vpack.c.bf16 %v1944_v3, %v1943_v4 }
 0xd47   :  { %v1947_v6 = vpop.permute.xlu1 %1946 }
 0xd48   :  { %v1949_v7 = vunpack.i.h.bf16 %v1947_v6  ;;  %v1948_v8 = vunpack.i.l.bf16 %v1947_v6  ;;  %1854 = vmatprep.subr.msk.bf16.mxu1 %vm2146_vm3, %v1852_v5 }
 0xd49   :  { %1857 = vmatpush3.bf16.xpose.msk.msra.mxu1 %vm2146_vm3, %v1852_v5 }
 0xd4a   :  { %v1858_v9 = vpack.c.bf16 %v1949_v7, %v1948_v8 }
 0xd4c   :  { %1860 = vmatprep.subr.msk.bf16.mxu1 %vm2146_vm3, %v1858_v9 }
 0xd51   :  { %1863 = vmatpush3.bf16.xpose.msk.msra.mxu1 %vm2146_vm3, %v1858_v9 }
 0xd58   :  { %1708 = vmatmul.mubr.msk.f32.vlgmr.msra.gmra.mrb[14].mxu1 %vm159_vm2, %v826_v61 }
 0xd59   :  { %1710 = vmatprep.mubr.msk.f32.mxu1 %vm159_vm2, %v828_v27 }
 0xd5c   :  { %1711 = vmatmul.mubr.msk.f32.gmra.mrb[16].mxu1 %vm159_vm2, %v830_v63 }
 0xe2b   :  { %v1709_v11 = vpop.f32.mrb[14].mxu1 }
 0xe2c   :  { %v927_v12 = vadd.f32 %v1709_v11, %v2164_v46  ;;  %v921_v14 = vpop.f32.mrb[15].mxu1  ;;  %v1470_v11 = vld [vmem:[%s2537_s4 + $0x20] sm:$0xff] }
 0xe2d   :  { %v922_v15 = vadd.f32 %v921_v14, %v2169_v47 }
 0xe2e   :  { %v943_v16 = vsel %vm37_vm0, %v927_v12, -inf }
 0xe2f   :  { %944 = vmax.xlane.f32.xlu1 %v943_v16  ;;  %v1712_v23 = vpop.f32.mrb[16].mxu1  ;;  %v940_v18 = vsel %vm37_vm0, %v922_v15, -inf  ;;  %v1473_v16 = vld [vmem:[%s2537_s4 + $0x38] sm:$0xff] }
 0xe30   :  { %v931_v40 = vpop.f32.mrb[17].mxu1  ;;  %941 = vmax.xlane.f32.xlu0 %v940_v18  ;;  %v937_v20 = vadd.f32 %v1712_v23, %v2183_v56 }
 0xe31   :  { %v932_v19 = vadd.f32 %v931_v40, %v2177_v53 }
 0xe32   :  { %v949_v46 = vsel %vm37_vm0, %v937_v20, -inf }
 0xe33   :  { %v946_v21 = vsel %vm37_vm0, %v932_v19, -inf }
 0xe34   :  { %947 = vmax.xlane.f32.xlu0 %v946_v21 }
 0xe38   :  { %950 = vmax.xlane.f32.xlu0 %v949_v46 }
 0xebc   :  { %v945_v22 = vpop.xlane.xlu1 %944 }
 0xebd   :  { %v953_v47 = vsub.f32 %v927_v12, %v945_v22  ;;  %v942_v24 = vpop.xlane.xlu0 %941  ;;  %v1471_v12 = vld [vmem:[%s2537_s4 + $0x28] sm:$0xff] }
 0xebe   :  { %v952_v28 = vsub.f32 %v922_v15, %v942_v24  ;;  %v1873_v14 = vpack.c.bf16 %v1471_v12, %v1470_v11  ;;  %v1472_v15 = vld [vmem:[%s2537_s4 + $0x30] sm:$0xff]  ;;  %v1491_v12 = vld [vmem:[%s2539_s6 + $0xd8] sm:$0xff] }
 0xebf   :  { %v958_v29 = vmul.f32 1.442695, %v953_v47  ;;  %v1876_v23 = vpack.c.bf16 %v1473_v16, %v1472_v15  ;;  %v1492_v15 = vld [vmem:[%s2539_s6 + $0xe0] sm:$0xff]  ;;  %v1493_v16 = vld [vmem:[%s2539_s6 + $0xe8] sm:$0xff] }
 0xec0   :  { %v956_v32 = vmul.f32 1.442695, %v952_v28  ;;  %1874 = vmatpush3.bf16.msra.mxu0 %v1873_v14 }
 0xec1   :  { %1984 = vpow2.f32 %v958_v29  ;;  %v948_v34 = vpop.xlane.xlu0 %947  ;;  %1875 = vmatprep.subr.bf16.mxu0 %v2030_v10  ;;  %v1116_v29 = vrot.slane %v2355_v55, %v437_v1  ;;  %v1476_v1 = vld [vmem:[%s2538_s5 + $0x28] sm:$0xff] }
 0xec2   :  { %1986 = vpow2.f32 %v956_v32  ;;  %v954_v35 = vsub.f32 %v932_v19, %v948_v34 }
 0xec4   :  { %v960_v37 = vmul.f32 1.442695, %v954_v35  ;;  %1877 = vmatpush3.bf16.msra.mxu0 %v1876_v23  ;;  %v1903_v23 = vpack.c.bf16 %v1493_v16, %v1492_v15 }
 0xec5   :  { %v951_v53 = vpop.xlane.xlu0 %950  ;;  %1884 = vmatprep.subr.bf16.mxu0 %v2030_v10 }
 0xec6   :  { %1988 = vpow2.f32 %v960_v37  ;;  %v955_v56 = vsub.f32 %v937_v20, %v951_v53 }
 0xec8   :  { %v962_v33 = vmul.f32 1.442695, %v955_v56 }
 0xeca   :  { %1990 = vpow2.f32 %v962_v33 }
 0xecb   :  { %v1985_v36 = vpop.eup %1984 }
 0xecc   :  { %v1987_v38 = vpop.eup %1986  ;;  %v967_v39 = vsel %vm37_vm0, %v1985_v36, 0.0 }
 0xecd   :  { %968 = vadd.xlane.f32.xlu0 %v967_v39  ;;  %v964_v41 = vsel %vm37_vm0, %v1987_v38, 0.0 }
 0xece   :  { %965 = vadd.xlane.f32.xlu1 %v964_v41 }
 0xed0   :  { %v1989_v42 = vpop.eup %1988 }
 0xed1   :  { %v970_v43 = vsel %vm37_vm0, %v1989_v42, 0.0 }
 0xed2   :  { %971 = vadd.xlane.f32.xlu1 %v970_v43 }
 0xed4   :  { %v1991_v48 = vpop.eup %1990 }
 0xed5   :  { %v973_v49 = vsel %vm37_vm0, %v1991_v48, 0.0 }
 0xed6   :  { %974 = vadd.xlane.f32.xlu0 %v973_v49  ;;  %v1481_v49 = vld [vmem:[%s2539_s6 + $0x88] sm:$0xff] }
 0xee3   :  { %1951 = vrot.lane.b32.xlu1 %v2364_v62, %s2037_s2 }
 0xeec   :  { %1956 = vrot.lane.b32.xlu0 %v1945_v26, %s2037_s2 }
 0xf5a   :  { %v969_v51 = vpop.xlane.xlu0 %968 }
 0xf5b   :  { %v966_v50 = vpop.xlane.xlu1 %965 }
 0xf5c   :  { %1992 = vrcp.f32 %v966_v50 }
 0xf5d   :  { %1994 = vrcp.f32 %v969_v51 }
 0xf5f   :  { %v972_v52 = vpop.xlane.xlu1 %971 }
 0xf60   :  { %1996 = vrcp.f32 %v972_v52 }
 0xf63   :  { %v1952_v57 = vpop.permute.xlu1 %1951  ;;  %v975_v58 = vpop.xlane.xlu0 %974 }
 0xf64   :  { %v1954_v59 = vunpack.i.h.bf16 %v1952_v57  ;;  %v1953_v60 = vunpack.i.l.bf16 %v1952_v57  ;;  %1998 = vrcp.f32 %v975_v58  ;;  %v1207_v58 = vrot.slane %v2355_v55, %v528_v30  ;;  %v1484_v30 = vld [vmem:[%s2539_s6 + $0xa0] sm:$0xff] }
 0xf66   :  { %v1993_v27 = vpop.eup %1992  ;;  %v1864_v61 = vpack.c.bf16 %v1954_v59, %v1953_v60  ;;  %v1212_v60 = vrot.slane %v2355_v55, %v533_v31  ;;  %v1485_v31 = vld [vmem:[%s2539_s6 + $0xa8] sm:$0xff] }
 0xf67   :  { %v1957_v63 = vpop.permute.xlu0 %1956  ;;  %v980_v2 = vmul.f32 %v1993_v27, %v1987_v38  ;;  %v1995_v26 = vpop.eup %1994 }
 0xf68   :  { %v1959_v3 = vunpack.i.h.bf16 %v1957_v63  ;;  %v1958_v4 = vunpack.i.l.bf16 %v1957_v63  ;;  %1865 = vmatprep.subr.bf16.mxu1 %v1864_v61  ;;  %v981_v6 = vmul.f32 %v1995_v26, %v1985_v36  ;;  %v1486_v26 = vld [vmem:[%s2539_s6 + $0xb0] sm:$0xff] }
 0xf69   :  { %1867 = vmatpush3.bf16.msra.mxu1 %v1864_v61  ;;  %1721 = vmatprep.mubr.msk.f32.mxu1 %vm37_vm0, %v980_v2  ;;  %v1482_v2 = vld [vmem:[%s2539_s6 + $0x90] sm:$0xff] }
 0xf6a   :  { %v1868_v62 = vpack.c.bf16 %v1959_v3, %v1958_v4  ;;  %v1997_v5 = vpop.eup %1996  ;;  %v1483_v3 = vld [vmem:[%s2539_s6 + $0x98] sm:$0xff] }
 0xf6b   :  { %v982_v8 = vmul.f32 %v1997_v5, %v1989_v42  ;;  %v1478_v42 = vld [vmem:[%s2538_s5 + $0x38] sm:$0xff]  ;;  %v1888_v4 = vpack.c.bf16 %v1483_v3, %v1482_v2 }
 0xf6c   :  { %1869 = vmatprep.subr.bf16.mxu1 %v1868_v62  ;;  %v1487_v5 = vld [vmem:[%s2539_s6 + $0xb8] sm:$0xff] }
 0xf6d   :  { %1871 = vmatpush3.bf16.msra.mxu1 %v1868_v62  ;;  %v1891_v62 = vpack.c.bf16 %v1485_v31, %v1484_v30 }
 0xf6e   :  { %1878 = vmatprep.subr.bf16.mxu1 %v2030_v10  ;;  %v1999_v7 = vpop.eup %1998 }
 0xf6f   :  { %v983_v9 = vmul.f32 %v1999_v7, %v1991_v48  ;;  %v1480_v48 = vld [vmem:[%s2539_s6 + $0x80] sm:$0xff] }
 0xf70   :  { %1722 = vmatmul.mubr.msk.f32.vlgmr.msra.gmra.mrb[18].mxu1 %vm37_vm0, %v981_v6  ;;  %v1885_v50 = vpack.c.bf16 %v1481_v49, %v1480_v48  ;;  %v1894_v6 = vpack.c.bf16 %v1487_v5, %v1486_v26  ;;  %v1488_v7 = vld [vmem:[%s2539_s6 + $0xc0] sm:$0xff] }
 0xf71   :  { %1724 = vmatprep.mubr.msk.f32.mxu1 %vm37_vm0, %v982_v8  ;;  %v1489_v8 = vld [vmem:[%s2539_s6 + $0xc8] sm:$0xff] }
 0xf72   :  { %v1897_v11 = vpack.c.bf16 %v1489_v8, %v1488_v7 }
 0xf74   :  { %1725 = vmatmul.mubr.msk.f32.gmra.mrb[20].mxu1 %vm37_vm0, %v983_v9  ;;  %v1490_v9 = vld [vmem:[%s2539_s6 + $0xd0] sm:$0xff] }
 0xf75   :  { %1746 = vmatprep.mubr.msk.f32.mxu1 %vm2031_vm1, %v2032_v13  ;;  %v1900_v14 = vpack.c.bf16 %v1491_v12, %v1490_v9 }
0x1043   :  { %v1723_v18 = vpop.f32.mrb[18].mxu1 }
0x1044   :  { %1094 = vrot.lane.b32.xlu1 %v1723_v18, %s2038_s16  ;;  %v1074_v40 = vpop.f32.mrb[19].mxu1  ;;  %v1494_v18 = vld [vmem:[%s2539_s6 + $0xf0] sm:$0xff] }
0x1047   :  { %v1726_v19 = vpop.f32.mrb[20].mxu1 }
0x1048   :  { %1102 = vrot.lane.b32.xlu0 %v1726_v19, %s2039_s17  ;;  %v1084_v20 = vpop.f32.mrb[21].mxu1 }
0x1049   :  { %1098 = vrot.lane.b32.xlu1 %v1084_v20, %s2040_s18  ;;  %v1222_v20 = vrot.slane %v2355_v55, %v542_v0 }
0x10b6   :  { %v1095_v21 = vpop.permute.xlu1 %1094 }
0x10b7   :  { %v1105_v46 = vsel %vm159_vm2, %v1074_v40, %v1095_v21  ;;  %v1495_v40 = vld [vmem:[%s2539_s6 + $0xf8] sm:$0xff]  ;;  %s2041_s6 = smov [#allocation2]  }
0x10b8   :  { %v1906_v19 = vpack.c.bf16 %v1495_v40, %v1494_v18  ;;  %s1427_s29 = sshll.u32 %s2041_s6, 4  ;;  %s1428_s29 = int_to_ptr.vmem [resolvable:$true] %s1427_s29 }
0x10b9   :  { %p2011_p1 = scmp.lt.s32.totalorder %s1428_s29, %s1428_s29 }
0x10ba   :  { %v1103_v47 = vpop.permute.xlu0 %1102 }
0x10bb   :  { %v1099_v22 = vpop.permute.xlu1 %1098 }
0x10bc   :  { %v1106_v24 = vsel %vm427_vm4, %v1105_v46, %v1099_v22 }
0x10bd   :  { %v1107_v28 = vsel %vm429_vm5, %v1106_v24, %v1103_v47 }
0x10be   :  { %1736 = vmatmul.mubr.msk.f32.vlgmr.msra.gmra.mrb[4].mxu0 %vm37_vm0, %v1107_v28 }
0x10bf   :  { %1781 = vmatprep.mubr.msk.f32.mxu0 %vm2031_vm1, %v2032_v13  ;;  %v1475_v13 = vld [vmem:[%s2538_s5 + $0x20] sm:$0xff]  ;;  %1886 = vmatpush3.bf16.msra.mxu0 %v1885_v50 }
0x10c0   :  { %v1879_v41 = vpack.c.bf16 %v1476_v1, %v1475_v13  ;;  %1887 = vmatprep.subr.bf16.mxu0 %v2030_v10 }
0x10c2   :  { %1880 = vmatpush3.bf16.msra.mxu1 %v1879_v41 }
0x10c3   :  { %1881 = vmatprep.subr.bf16.mxu1 %v2030_v10  ;;  %1889 = vmatpush3.bf16.msra.mxu0 %v1888_v4 }
0x10c4   :  { %1890 = vmatprep.subr.bf16.mxu0 %v2030_v10 }
0x10c7   :  { %1892 = vmatpush3.bf16.msra.mxu0 %v1891_v62 }
0x10c8   :  { %1893 = vmatprep.subr.bf16.mxu0 %v2030_v10 }
0x10cb   :  { %1895 = vmatpush3.bf16.msra.mxu0 %v1894_v6 }
0x10cc   :  { %1896 = vmatprep.subr.bf16.mxu0 %v2030_v10 }
0x10cf   :  { %1898 = vmatpush3.bf16.msra.mxu0 %v1897_v11 }
0x10d0   :  { %1899 = vmatprep.subr.bf16.mxu0 %v2030_v10 }
0x10d3   :  { %1901 = vmatpush3.bf16.msra.mxu0 %v1900_v14 }
0x10d4   :  { %1902 = vmatprep.subr.bf16.mxu0 %v2030_v10 }
0x10d7   :  { %1904 = vmatpush3.bf16.msra.mxu0 %v1903_v23 }
0x10d8   :  { %1905 = vmatprep.subr.bf16.mxu0 %v2030_v10  ;;  %v1325_v10 = vrot.slane %v2355_v55, %v644_v17  ;;  %v1413_v17 = vrot.slane %v2355_v55, %v732_v44 }
0x10db   :  { %1907 = vmatpush3.bf16.msra.mxu0 %v1906_v19 }
0x1191   :  { %v1186_v32 = vpop.f32.mrb[4].mxu0 }
0x1192   :  { %v1187_v34 = vadd.f32 %v1186_v32, %v1116_v29  ;;  %v1737_v35 = vpop.f32.mrb[5].mxu0 }
0x1194   :  { %v1190_v37 = vadd.f32 %v1187_v34, %v2348_v54  ;;  %v1477_v54 = vld [vmem:[%s2538_s5 + $0x30] sm:$0xff]  ;;  %s2006_s5 = scalar_lea.vmem %s1428_s29, 128 }
0x1195   :  { %v1882_v43 = vpack.c.bf16 %v1478_v42, %v1477_v54  ;;  %p2007_p0 = scmp.ne.s32.totalorder %s1428_s29, %s2006_s5  ;;  %p2012_p2 = scmp.lt.s32.totalorder %s2006_s5, %s2006_s5 }
0x1196   :  { %v1191_v53 = vsel %vm37_vm0, %v1190_v37, 0.0 }
0x1197   :  { %1192 = vadd.xlane.f32.xlu1 %v1191_v53  ;;  %1883 = vmatpush3.bf16.msra.mxu1 %v1882_v43  ;;  %p2013_p3 = por %p2012_p2, %p2011_p1 }
0x1199   :  { %p2014_p4 = pnand %p2013_p3, %p2007_p0 }
0x1224   :  { %v1193_v56 = vpop.xlane.xlu1 %1192 }
0x1225   :  { %v1194_v33 = vmul.f32 0.03125, %v1193_v56 }
0x1227   :  { %v1195_v36 = vsub.f32 %v1190_v37, %v1194_v33 }
0x1229   :  { %v1196_v38 = vmul.f32 %v1195_v36, %v1195_v36 }
0x122b   :  { %v1197_v39 = vsel %vm37_vm0, %v1196_v38, 0.0 }
0x122c   :  { %1198 = vadd.xlane.f32.xlu0 %v1197_v39 }
0x12b9   :  { %v1199_v51 = vpop.xlane.xlu0 %1198 }
0x12ba   :  { %v1200_v52 = vmul.f32 0.03125, %v1199_v51  ;;  %v1418_v51 = vrot.slane %v2355_v55, %v737_v45 }
0x12bc   :  { %v1201_v57 = vadd.f32 1e-12, %v1200_v52 }
0x12be   :  { %2000 = vrsqrt.f32 %v1201_v57 }
0x12c8   :  { %v2001_v59 = vpop.eup %2000 }
0x12c9   :  { %v1203_v27 = vmul.f32 %v2001_v59, %v1195_v36 }
0x12cb   :  { %v1208_v61 = vmul.f32 %v1207_v58, %v1203_v27 }
0x12cd   :  { %v1213_v63 = vadd.f32 %v1212_v60, %v1208_v61 }
0x12cf   :  { %1747 = vmatmul.mubr.msk.f32.vlgmr.msra.gmra.mrb[22].mxu1 %vm37_vm0, %v1213_v63 }
0x13a2   :  { %v1292_v21 = vpop.f32.mrb[22].mxu1 }
0x13a3   :  { %v1293_v46 = vadd.f32 %v1292_v21, %v1222_v20  ;;  %v1748_v22 = vpop.f32.mrb[23].mxu1 }
0x13a5   :  { %v1296_v47 = vmul.f32 %v1293_v46, %v1293_v46 }
0x13a7   :  { %v1297_v24 = vmul.f32 %v1296_v47, %v1293_v46 }
0x13a9   :  { %v1298_v28 = vmul.f32 0.044715, %v1297_v24 }
0x13ab   :  { %v1299_v29 = vadd.f32 %v1298_v28, %v1293_v46 }
0x13ad   :  { %v1300_v32 = vmul.f32 0.7978846, %v1299_v29 }
0x13af   :  { %2002 = vtanh.f32 %v1300_v32 }
0x13b9   :  { %v2003_v34 = vpop.eup %2002 }
0x13ba   :  { %v1302_v35 = vadd.f32 1.0, %v2003_v34 }
0x13bc   :  { %v1303_v37 = vmul.f32 0.5, %v1302_v35 }
0x13be   :  { %v1304_v53 = vmul.f32 %v1303_v37, %v1293_v46 }
0x13c0   :  { %1782 = vmatmul.mubr.f32.vlgmr.msra.gmra.mrb[6].mxu0 %v1304_v53 }
0x1493   :  { %v1392_v56 = vpop.f32.mrb[6].mxu0 }
0x1494   :  { %v1393_v0 = vadd.f32 %v1392_v56, %v1325_v10  ;;  %v1783_v33 = vpop.f32.mrb[7].mxu0 }
0x1496   :  { %v1396_v36 = vadd.f32 %v1393_v0, %v1213_v63 }
0x1498   :  { %v1397_v38 = vsel %vm37_vm0, %v1396_v36, 0.0 }
0x1499   :  { %1398 = vadd.xlane.f32.xlu0 %v1397_v38 }
0x1526   :  { %v1399_v39 = vpop.xlane.xlu0 %1398 }
0x1527   :  { %v1400_v13 = vmul.f32 0.03125, %v1399_v39 }
0x1529   :  { %v1401_v1 = vsub.f32 %v1396_v36, %v1400_v13 }
0x152b   :  { %v1402_v41 = vmul.f32 %v1401_v1, %v1401_v1 }
0x152d   :  { %v1403_v54 = vsel %vm37_vm0, %v1402_v41, 0.0 }
0x152e   :  { %1404 = vadd.xlane.f32.xlu1 %v1403_v54 }
0x15bb   :  { %v1405_v42 = vpop.xlane.xlu1 %1404 }
0x15bc   :  { %v1406_v43 = vmul.f32 0.03125, %v1405_v42 }
0x15be   :  { %v1407_v48 = vadd.f32 1e-12, %v1406_v43 }
0x15c0   :  { %2004 = vrsqrt.f32 %v1407_v48 }
0x15ca   :  { %v2005_v49 = vpop.eup %2004 }
0x15cb   :  { %v1409_v50 = vmul.f32 %v2005_v49, %v1401_v1 }
0x15cd   :  { %v1414_v52 = vmul.f32 %v1413_v17, %v1409_v50 }
0x15cf   :  { %v1419_v57 = vadd.f32 %v1418_v51, %v1414_v52 }
0x15d1   :  { %1420 = vst.msk [vmem:[#allocation2] sm:$0xff] %vm37_vm0, %v1419_v57 }
0x15d2   :  { %2017 = shalt.err (!%p2014_p4)
}
0x15d3   :  { %s2018_s10 = scalar_lea.hbm %s2541_s8, 128 }
0x15d4   :  { %p2019_p5 = scmp.ne.s32.totalorder %s2541_s8, %s2018_s10  ;;  %p2022_p6 = scmp.lt.u32.totalorder %s2018_s10, %s2541_s8 }
0x15d6   :  { %p2024_p7 = pnand %p2022_p6, %p2019_p5 }
0x15d8   :  { %2027 = shalt.err (!%p2024_p7)
}
0x15d9   :  { %1430 = dma.vmem_to_hbm [thread:$0]  %s1428_s29, 128, %s2541_s8, [#allocation3]  }
0x15da   :  { %2028 = dma.done.wait [#allocation3], 128  }
0x15db   :  { %2029 = vsyncadd [#allocation3], 4294967168 }
0x15dc   :  { %1434 = vsyncpa [#allocation3], 1 }

</bundles_post_ra>
